<compile_context>
chip_gen: v7x
topology: tpu7x:2x2x1
jax: 0.10.0
libtpu: 0.0.40
codegen_flags: <defaults>
</compile_context>

<pallas_src>
import functools

import jax
import jax.numpy as jnp
from jax.experimental import pallas as pl
from jax.experimental.pallas import tpu as pltpu


def _round_up(x, m):
    return ((x + m - 1) // m) * m


def _cdiv(a, b):
    return (a + b - 1) // b


def _default_tm():
    # 256-row tiles feed the 2x256x256 MXU on v6e/v7x; 128 matches v5e's
    # 4x128x128 MXU and its tighter store/VMEM budget.
    try:
        kind = jax.devices()[0].device_kind.lower()
    except Exception:
        kind = ""
    return 128 if "v5" in kind else 256


def _choose_tk(d_pad, tk_max=1024):
    """Largest multiple of 128 that divides d_pad and is <= tk_max."""
    best = 128
    for t in range(128, min(d_pad, tk_max) + 1, 128):
        if d_pad % t == 0:
            best = t
    return best


# ---------------------------------------------------------------------------
# Kernel: grid = (M tiles [parallel], K tiles over D [arbitrary]).
# First matmul is K-accumulated into an f32 VMEM scratch; bias/ReLU and the
# two projector matmuls run only on the last K step.
# ---------------------------------------------------------------------------
def _ssl_fused_kernel(x_ref, w0_ref, b0_ref, w1_ref, b1_ref, w2_ref, b2_ref,
                      o_ref, h_acc):
    k = pl.program_id(1)

    @pl.when(k == 0)
    def _():
        h_acc[...] = jnp.zeros_like(h_acc)

    # emb_f partial product: bf16 on the MXU, f32 accumulate.
    # (astype is a no-op when x already streamed in as bf16.)
    x = x_ref[...].astype(jnp.bfloat16)
    h_acc[...] += jnp.dot(x, w0_ref[...], preferred_element_type=jnp.float32)

    @pl.when(k == pl.num_programs(1) - 1)
    def _():
        h = jnp.maximum(h_acc[...] + b0_ref[...], 0.0)                  # f32
        p = jnp.dot(h.astype(w1_ref.dtype), w1_ref[...],
                    preferred_element_type=jnp.float32) + b1_ref[...]
        p = jnp.maximum(p, 0.0)
        z = jnp.dot(p.astype(w2_ref.dtype), w2_ref[...],
                    preferred_element_type=jnp.float32) + b2_ref[...]
        o_ref[...] = z.astype(o_ref.dtype)


def _fused_forward(x_flat, w0, b0, w1, b1, w2, b2, *, tm, tk):
    """x_flat: [N, D] (N % tm == 0, D % tk == 0) -> [N, PROJ] f32."""
    n, d = x_flat.shape
    emb = w0.shape[1]
    proj = w2.shape[1]
    grid = (n // tm, d // tk)
    xbytes = jnp.dtype(x_flat.dtype).itemsize

    # Tile VMEM footprint (pipelined tensors double-buffered) + margin.
    footprint = (
        2 * tm * tk * xbytes       # x tile (f32 or bf16), double buffered
        + 2 * tk * emb * 2         # W0 tile (bf16), double buffered
        + 2 * emb * proj * 2       # W1 (constant index_map -> resident)
        + 2 * proj * proj * 2      # W2 (resident)
        + 2 * (emb + 2 * proj) * 4 # biases (f32)
        + 2 * tm * proj * 4        # output tile (f32)
        + tm * emb * 4             # f32 accumulator scratch
    )
    vmem_limit = min(2 * footprint + (16 << 20), 64 << 20)

    return pl.pallas_call(
        _ssl_fused_kernel,
        out_shape=jax.ShapeDtypeStruct((n, proj), jnp.float32),
        grid_spec=pltpu.PrefetchScalarGridSpec(
            num_scalar_prefetch=0,
            grid=grid,
            in_specs=[
                pl.BlockSpec((tm, tk), lambda i, k: (i, k)),      # x  (stream)
                pl.BlockSpec((tk, emb), lambda i, k: (k, 0)),     # W0 (stream K)
                pl.BlockSpec((1, emb), lambda i, k: (0, 0)),      # b0 (resident)
                pl.BlockSpec((emb, proj), lambda i, k: (0, 0)),   # W1 (resident)
                pl.BlockSpec((1, proj), lambda i, k: (0, 0)),     # b1 (resident)
                pl.BlockSpec((proj, proj), lambda i, k: (0, 0)),  # W2 (resident)
                pl.BlockSpec((1, proj), lambda i, k: (0, 0)),     # b2 (resident)
            ],
            out_specs=pl.BlockSpec((tm, proj), lambda i, k: (i, 0)),
            scratch_shapes=[pltpu.VMEM((tm, emb), jnp.float32)],
        ),
        compiler_params=pltpu.CompilerParams(
            dimension_semantics=("parallel", "arbitrary"),
            vmem_limit_bytes=vmem_limit,
        ),
    )(x_flat, w0, b0, w1, b1, w2, b2)


def _forward_view(x, params, *, tm_max, tk, d_pad, proj_dim):
    w0, b0, w1, b1, w2, b2 = params
    b = x.shape[0]
    xf = x.reshape(b, -1)                                    # flatten NCHW
    in_dim = xf.shape[1]

    # Batch tile sized to the actual (static) batch: minimal row padding,
    # big MXU-friendly tiles for large batches.
    n_tiles = _cdiv(b, tm_max)
    tm = _round_up(_cdiv(b, n_tiles), 8)
    rows = n_tiles * tm

    if rows != b or d_pad != in_dim:
        # Pad + pre-cast to bf16 in one XLA pass (zeros don't change the math).
        xf = jnp.pad(xf, ((0, rows - b), (0, d_pad - in_dim))).astype(jnp.bfloat16)
    # else: already (8,128)-aligned -> stream f32 straight from HBM, the
    # kernel casts per tile (saves a full HBM round trip over x).

    z = _fused_forward(xf, w0, b0, w1, b1, w2, b2, tm=tm, tk=tk)
    return z[:b, :proj_dim]


def _forward_impl(params, x1, x2, *, tm_max, tk, d_pad, proj_dim):
    # Shared weights applied to both views; each view streams straight from
    # its own HBM buffer (no concatenate copy of the activations).
    z1 = _forward_view(x1, params, tm_max=tm_max, tk=tk, d_pad=d_pad,
                       proj_dim=proj_dim)
    z2 = _forward_view(x2, params, tm_max=tm_max, tk=tk, d_pad=d_pad,
                       proj_dim=proj_dim)
    return z1, z2


class SSLModelWrapperPallas:
    """JAX/Pallas equivalent of SSLModelWrapper(emb_f, proj_f)."""

    def __init__(self, params, *, tm=None, tk_max=1024):
        w0, b0, w1, b1, w2, b2 = params
        self.in_dim = w0.shape[0]
        self.emb_dim = w0.shape[1]
        self.proj_dim = w2.shape[1]

        self.tm_max = _default_tm() if tm is None else tm
        self.d_pad = _round_up(self.in_dim, 128)
        self.tk = _choose_tk(self.d_pad, tk_max)
        emb_pad = _round_up(self.emb_dim, 128)
        proj_pad = _round_up(self.proj_dim, 128)

        def pad2(a, r, c):
            return jnp.pad(a, ((0, r - a.shape[0]), (0, c - a.shape[1])))

        # Pad once (zeros don't change the math); matmul operands in bf16 for
        # the MXU, biases stay f32 (added post-accumulation).
        self._params = (
            pad2(w0, self.d_pad, emb_pad).astype(jnp.bfloat16),
            pad2(b0, 1, emb_pad).astype(jnp.float32),
            pad2(w1, emb_pad, proj_pad).astype(jnp.bfloat16),
            pad2(b1, 1, proj_pad).astype(jnp.float32),
            pad2(w2, proj_pad, proj_pad).astype(jnp.bfloat16),
            pad2(b2, 1, proj_pad).astype(jnp.float32),
        )

        self._fn = jax.jit(functools.partial(
            _forward_impl, tm_max=self.tm_max, tk=self.tk,
            d_pad=self.d_pad, proj_dim=self.proj_dim))

    def __call__(self, x1, x2):
        # x1, x2: [B, C, H, W] float32 (NCHW, matching PyTorch).
        return self._fn(self._params, x1, x2)


def init_params(key, in_dim, emb_dim, proj_dim):
    k0, k1, k2 = jax.random.split(key, 3)
    w0 = jax.random.normal(k0, (in_dim, emb_dim), jnp.float32) / jnp.sqrt(in_dim)
    b0 = jnp.zeros((1, emb_dim), jnp.float32)
    w1 = jax.random.normal(k1, (emb_dim, proj_dim), jnp.float32) / jnp.sqrt(emb_dim)
    b1 = jnp.zeros((1, proj_dim), jnp.float32)
    w2 = jax.random.normal(k2, (proj_dim, proj_dim), jnp.float32) / jnp.sqrt(proj_dim)
    b2 = jnp.zeros((1, proj_dim), jnp.float32)
    return (w0, b0, w1, b1, w2, b2)


if __name__ == "__main__":
    # Small shapes consistent with an SSL image pipeline.
    B, C, H, W = 2, 4, 16, 16
    IN_DIM = C * H * W          # 1024
    EMB_DIM = 256
    PROJ_DIM = 128

    key = jax.random.PRNGKey(0)
    kx1, kx2, kp = jax.random.split(key, 3)
    x1 = jax.random.normal(kx1, (B, C, H, W), jnp.float32)
    x2 = jax.random.normal(kx2, (B, C, H, W), jnp.float32)

    params = init_params(kp, IN_DIM, EMB_DIM, PROJ_DIM)
    model = SSLModelWrapperPallas(params)

    z1, z2 = model(x1, x2)
    jax.block_until_ready((z1, z2))

    # Pure-JAX reference with the same bf16-on-MXU / f32-accumulate recipe.
    def ref(x):
        w0, b0, w1, b1, w2, b2 = params
        xf = x.reshape(x.shape[0], -1).astype(jnp.bfloat16)
        h = jnp.maximum(jnp.dot(xf, w0.astype(jnp.bfloat16),
                                preferred_element_type=jnp.float32) + b0, 0.0)
        p = jnp.maximum(jnp.dot(h.astype(jnp.bfloat16), w1.astype(jnp.bfloat16),
                                preferred_element_type=jnp.float32) + b1, 0.0)
        return jnp.dot(p.astype(jnp.bfloat16), w2.astype(jnp.bfloat16),
                       preferred_element_type=jnp.float32) + b2

    assert z1.shape == (B, PROJ_DIM) and z2.shape == (B, PROJ_DIM)
    assert jnp.allclose(z1, ref(x1), atol=2e-2, rtol=2e-2)
    assert jnp.allclose(z2, ref(x2), atol=2e-2, rtol=2e-2)

    # Sanity-check an aligned batch (exercises the no-pad f32-streaming path).
    B2 = 16
    x1b = jax.random.normal(kx1, (B2, C, H, W), jnp.float32)
    x2b = jax.random.normal(kx2, (B2, C, H, W), jnp.float32)
    z1b, z2b = model(x1b, x2b)
    jax.block_until_ready((z1b, z2b))
    assert jnp.allclose(z1b, ref(x1b), atol=2e-2, rtol=2e-2)
    assert jnp.allclose(z2b, ref(x2b), atol=2e-2, rtol=2e-2)

    print("KERNEL_OK")
</pallas_src>

<mosaic_0001>
module attributes {stable_mosaic.version = 11 : i64} {
  func.func @_ssl_fused_kernel(%arg0: i32, %arg1: i32, %arg2: memref<8x1024xbf16, #tpu.memory_space<vmem>>, %arg3: memref<1024x256xbf16, #tpu.memory_space<vmem>>, %arg4: memref<1x256xf32, #tpu.memory_space<vmem>>, %arg5: memref<256x128xbf16, #tpu.memory_space<vmem>>, %arg6: memref<1x128xf32, #tpu.memory_space<vmem>>, %arg7: memref<128x128xbf16, #tpu.memory_space<vmem>>, %arg8: memref<1x128xf32, #tpu.memory_space<vmem>>, %arg9: memref<8x128xf32, #tpu.memory_space<vmem>>, %arg10: memref<8x256xf32, #tpu.memory_space<vmem>>) attributes {dimension_semantics = [#tpu.dimension_semantics<parallel>, #tpu.dimension_semantics<arbitrary>], iteration_bounds = array<i64: 1, 1>, scalar_prefetch = 0 : i64, scratch_operands = 1 : i64, tpu.core_type = #tpu.core_type<tc>, window_params = [{transform_indices = @transform_0, window_bounds = array<i64: 8, 1024>}, {transform_indices = @transform_1, window_bounds = array<i64: 1024, 256>}, {pipeline_mode = #tpu.pipeline_mode<synchronous>, transform_indices = @transform_2, window_bounds = array<i64: 1, 256>}, {pipeline_mode = #tpu.pipeline_mode<synchronous>, transform_indices = @transform_3, window_bounds = array<i64: 256, 128>}, {pipeline_mode = #tpu.pipeline_mode<synchronous>, transform_indices = @transform_4, window_bounds = array<i64: 1, 128>}, {pipeline_mode = #tpu.pipeline_mode<synchronous>, transform_indices = @transform_5, window_bounds = array<i64: 128, 128>}, {pipeline_mode = #tpu.pipeline_mode<synchronous>, transform_indices = @transform_6, window_bounds = array<i64: 1, 128>}, {transform_indices = @transform_7, window_bounds = array<i64: 8, 128>}]} {
    %c0_i32 = arith.constant 0 : i32
    %0 = arith.cmpi eq, %arg1, %c0_i32 : i32
    %1 = arith.extui %0 : i1 to i32
    %c0_i32_0 = arith.constant 0 : i32
    %2 = arith.cmpi ne, %1, %c0_i32_0 : i32
    scf.if %2 {
      %cst_10 = arith.constant 0.000000e+00 : f32
      %12 = vector.broadcast %cst_10 : f32 to vector<8x256xf32>
      %c0_11 = arith.constant 0 : index
      %c0_12 = arith.constant 0 : index
      %13 = vector.load %arg10[%c0_11, %c0_12] : memref<8x256xf32, #tpu.memory_space<vmem>>, vector<8x256xf32>
      tpu.vector_store %arg10[%c0_11, %c0_12], %12 {strides = array<i32>} : memref<8x256xf32, #tpu.memory_space<vmem>>, vector<8x256xf32>,
    } else {
    }
    %c0 = arith.constant 0 : index
    %c0_1 = arith.constant 0 : index
    %3 = vector.load %arg2[%c0, %c0_1] : memref<8x1024xbf16, #tpu.memory_space<vmem>>, vector<8x1024xbf16>
    %c0_2 = arith.constant 0 : index
    %c0_3 = arith.constant 0 : index
    %4 = vector.load %arg10[%c0_2, %c0_3] : memref<8x256xf32, #tpu.memory_space<vmem>>, vector<8x256xf32>
    %c0_4 = arith.constant 0 : index
    %c0_5 = arith.constant 0 : index
    %5 = vector.load %arg3[%c0_4, %c0_5] : memref<1024x256xbf16, #tpu.memory_space<vmem>>, vector<1024x256xbf16>
    %cst = arith.constant dense<0.000000e+00> : vector<8x256xf32>
    %6 = tpu.matmul %3, %5, %cst {dimension_numbers = #tpu.dot_dimension_numbers<[1], [0], [0], [1], [0, 0, 1, 1], [], []>} : vector<8x1024xbf16>, vector<1024x256xbf16>, vector<8x256xf32> -> vector<8x256xf32>
    %7 = arith.addf %4, %6 : vector<8x256xf32>
    %c0_6 = arith.constant 0 : index
    %c0_7 = arith.constant 0 : index
    %8 = vector.load %arg10[%c0_6, %c0_7] : memref<8x256xf32, #tpu.memory_space<vmem>>, vector<8x256xf32>
    tpu.vector_store %arg10[%c0_6, %c0_7], %7 {strides = array<i32>} : memref<8x256xf32, #tpu.memory_space<vmem>>, vector<8x256xf32>,
    %c0_i32_8 = arith.constant 0 : i32
    %9 = arith.cmpi eq, %arg1, %c0_i32_8 : i32
    %10 = arith.extui %9 : i1 to i32
    %c0_i32_9 = arith.constant 0 : i32
    %11 = arith.cmpi ne, %10, %c0_i32_9 : i32
    scf.if %11 {
      %c0_10 = arith.constant 0 : index
      %c0_11 = arith.constant 0 : index
      %12 = vector.load %arg10[%c0_10, %c0_11] : memref<8x256xf32, #tpu.memory_space<vmem>>, vector<8x256xf32>
      %c0_12 = arith.constant 0 : index
      %c0_13 = arith.constant 0 : index
      %13 = vector.load %arg4[%c0_12, %c0_13] : memref<1x256xf32, #tpu.memory_space<vmem>>, vector<1x256xf32>
      %14 = vector.broadcast %13 : vector<1x256xf32> to vector<8x256xf32>
      %15 = arith.addf %12, %14 : vector<8x256xf32>
      %cst_14 = arith.constant 0.000000e+00 : f32
      %16 = vector.broadcast %cst_14 : f32 to vector<8x256xf32>
      %17 = arith.maximumf %15, %16 : vector<8x256xf32>
      %18 = arith.truncf %17 : vector<8x256xf32> to vector<8x256xbf16>
      %c0_15 = arith.constant 0 : index
      %c0_16 = arith.constant 0 : index
      %19 = vector.load %arg5[%c0_15, %c0_16] : memref<256x128xbf16, #tpu.memory_space<vmem>>, vector<256x128xbf16>
      %cst_17 = arith.constant dense<0.000000e+00> : vector<8x128xf32>
      %20 = tpu.matmul %18, %19, %cst_17 {dimension_numbers = #tpu.dot_dimension_numbers<[1], [0], [0], [1], [0, 0, 1, 1], [], []>} : vector<8x256xbf16>, vector<256x128xbf16>, vector<8x128xf32> -> vector<8x128xf32>
      %c0_18 = arith.constant 0 : index
      %c0_19 = arith.constant 0 : index
      %21 = vector.load %arg6[%c0_18, %c0_19] : memref<1x128xf32, #tpu.memory_space<vmem>>, vector<1x128xf32>
      %22 = vector.broadcast %21 : vector<1x128xf32> to vector<8x128xf32>
      %23 = arith.addf %20, %22 : vector<8x128xf32>
      %cst_20 = arith.constant 0.000000e+00 : f32
      %24 = vector.broadcast %cst_20 : f32 to vector<8x128xf32>
      %25 = arith.maximumf %23, %24 : vector<8x128xf32>
      %26 = arith.truncf %25 : vector<8x128xf32> to vector<8x128xbf16>
      %c0_21 = arith.constant 0 : index
      %c0_22 = arith.constant 0 : index
      %27 = vector.load %arg7[%c0_21, %c0_22] : memref<128x128xbf16, #tpu.memory_space<vmem>>, vector<128x128xbf16>
      %cst_23 = arith.constant dense<0.000000e+00> : vector<8x128xf32>
      %28 = tpu.matmul %26, %27, %cst_23 {dimension_numbers = #tpu.dot_dimension_numbers<[1], [0], [0], [1], [0, 0, 1, 1], [], []>} : vector<8x128xbf16>, vector<128x128xbf16>, vector<8x128xf32> -> vector<8x128xf32>
      %c0_24 = arith.constant 0 : index
      %c0_25 = arith.constant 0 : index
      %29 = vector.load %arg8[%c0_24, %c0_25] : memref<1x128xf32, #tpu.memory_space<vmem>>, vector<1x128xf32>
      %30 = vector.broadcast %29 : vector<1x128xf32> to vector<8x128xf32>
      %31 = arith.addf %28, %30 : vector<8x128xf32>
      %c0_26 = arith.constant 0 : index
      %c0_27 = arith.constant 0 : index
      %32 = vector.load %arg9[%c0_26, %c0_27] : memref<8x128xf32, #tpu.memory_space<vmem>>, vector<8x128xf32>
      tpu.vector_store %arg9[%c0_26, %c0_27], %31 {strides = array<i32>} : memref<8x128xf32, #tpu.memory_space<vmem>>, vector<8x128xf32>,
    } else {
    }
    return
  }
  func.func @transform_0(%arg0: i32, %arg1: i32) -> (i32, i32) {
    %c0_i32 = arith.constant 0 : i32
    return %arg0, %arg1 : i32, i32
  }
  func.func @transform_1(%arg0: i32, %arg1: i32) -> (i32, i32) {
    %c0_i32 = arith.constant 0 : i32
    %c0_i32_0 = arith.constant 0 : i32
    return %arg1, %c0_i32 : i32, i32
  }
  func.func @transform_2(%arg0: i32, %arg1: i32) -> (i32, i32) {
    %c0_i32 = arith.constant 0 : i32
    %c0_i32_0 = arith.constant 0 : i32
    %c0_i32_1 = arith.constant 0 : i32
    return %c0_i32, %c0_i32_0 : i32, i32
  }
  func.func @transform_3(%arg0: i32, %arg1: i32) -> (i32, i32) {
    %c0_i32 = arith.constant 0 : i32
    %c0_i32_0 = arith.constant 0 : i32
    %c0_i32_1 = arith.constant 0 : i32
    return %c0_i32, %c0_i32_0 : i32, i32
  }
  func.func @transform_4(%arg0: i32, %arg1: i32) -> (i32, i32) {
    %c0_i32 = arith.constant 0 : i32
    %c0_i32_0 = arith.constant 0 : i32
    %c0_i32_1 = arith.constant 0 : i32
    return %c0_i32, %c0_i32_0 : i32, i32
  }
  func.func @transform_5(%arg0: i32, %arg1: i32) -> (i32, i32) {
    %c0_i32 = arith.constant 0 : i32
    %c0_i32_0 = arith.constant 0 : i32
    %c0_i32_1 = arith.constant 0 : i32
    return %c0_i32, %c0_i32_0 : i32, i32
  }
  func.func @transform_6(%arg0: i32, %arg1: i32) -> (i32, i32) {
    %c0_i32 = arith.constant 0 : i32
    %c0_i32_0 = arith.constant 0 : i32
    %c0_i32_1 = arith.constant 0 : i32
    return %c0_i32, %c0_i32_0 : i32, i32
  }
  func.func @transform_7(%arg0: i32, %arg1: i32) -> (i32, i32) {
    %c0_i32 = arith.constant 0 : i32
    %c0_i32_0 = arith.constant 0 : i32
    return %arg0, %c0_i32 : i32, i32
  }
}

module attributes {stable_mosaic.version = 11 : i64} {
  func.func @_ssl_fused_kernel(%arg0: i32, %arg1: i32, %arg2: memref<8x1024xbf16, #tpu.memory_space<vmem>>, %arg3: memref<1024x256xbf16, #tpu.memory_space<vmem>>, %arg4: memref<1x256xf32, #tpu.memory_space<vmem>>, %arg5: memref<256x128xbf16, #tpu.memory_space<vmem>>, %arg6: memref<1x128xf32, #tpu.memory_space<vmem>>, %arg7: memref<128x128xbf16, #tpu.memory_space<vmem>>, %arg8: memref<1x128xf32, #tpu.memory_space<vmem>>, %arg9: memref<8x128xf32, #tpu.memory_space<vmem>>, %arg10: memref<8x256xf32, #tpu.memory_space<vmem>>) attributes {dimension_semantics = [#tpu.dimension_semantics<parallel>, #tpu.dimension_semantics<arbitrary>], iteration_bounds = array<i64: 1, 1>, scalar_prefetch = 0 : i64, scratch_operands = 1 : i64, tpu.core_type = #tpu.core_type<tc>, window_params = [{transform_indices = @transform_0, window_bounds = array<i64: 8, 1024>}, {transform_indices = @transform_1, window_bounds = array<i64: 1024, 256>}, {pipeline_mode = #tpu.pipeline_mode<synchronous>, transform_indices = @transform_2, window_bounds = array<i64: 1, 256>}, {pipeline_mode = #tpu.pipeline_mode<synchronous>, transform_indices = @transform_3, window_bounds = array<i64: 256, 128>}, {pipeline_mode = #tpu.pipeline_mode<synchronous>, transform_indices = @transform_4, window_bounds = array<i64: 1, 128>}, {pipeline_mode = #tpu.pipeline_mode<synchronous>, transform_indices = @transform_5, window_bounds = array<i64: 128, 128>}, {pipeline_mode = #tpu.pipeline_mode<synchronous>, transform_indices = @transform_6, window_bounds = array<i64: 1, 128>}, {transform_indices = @transform_7, window_bounds = array<i64: 8, 128>}]} {
    %c0_i32 = arith.constant 0 : i32
    %0 = arith.cmpi eq, %arg1, %c0_i32 : i32
    %1 = arith.extui %0 : i1 to i32
    %c0_i32_0 = arith.constant 0 : i32
    %2 = arith.cmpi ne, %1, %c0_i32_0 : i32
    scf.if %2 {
      %cst_10 = arith.constant 0.000000e+00 : f32
      %12 = vector.broadcast %cst_10 : f32 to vector<8x256xf32>
      %c0_11 = arith.constant 0 : index
      %c0_12 = arith.constant 0 : index
      %13 = vector.load %arg10[%c0_11, %c0_12] : memref<8x256xf32, #tpu.memory_space<vmem>>, vector<8x256xf32>
      tpu.vector_store %arg10[%c0_11, %c0_12], %12 {strides = array<i32>} : memref<8x256xf32, #tpu.memory_space<vmem>>, vector<8x256xf32>,
    } else {
    }
    %c0 = arith.constant 0 : index
    %c0_1 = arith.constant 0 : index
    %3 = vector.load %arg2[%c0, %c0_1] : memref<8x1024xbf16, #tpu.memory_space<vmem>>, vector<8x1024xbf16>
    %c0_2 = arith.constant 0 : index
    %c0_3 = arith.constant 0 : index
    %4 = vector.load %arg10[%c0_2, %c0_3] : memref<8x256xf32, #tpu.memory_space<vmem>>, vector<8x256xf32>
    %c0_4 = arith.constant 0 : index
    %c0_5 = arith.constant 0 : index
    %5 = vector.load %arg3[%c0_4, %c0_5] : memref<1024x256xbf16, #tpu.memory_space<vmem>>, vector<1024x256xbf16>
    %cst = arith.constant dense<0.000000e+00> : vector<8x256xf32>
    %6 = tpu.matmul %3, %5, %cst {dimension_numbers = #tpu.dot_dimension_numbers<[1], [0], [0], [1], [0, 0, 1, 1], [], []>} : vector<8x1024xbf16>, vector<1024x256xbf16>, vector<8x256xf32> -> vector<8x256xf32>
    %7 = arith.addf %4, %6 : vector<8x256xf32>
    %c0_6 = arith.constant 0 : index
    %c0_7 = arith.constant 0 : index
    %8 = vector.load %arg10[%c0_6, %c0_7] : memref<8x256xf32, #tpu.memory_space<vmem>>, vector<8x256xf32>
    tpu.vector_store %arg10[%c0_6, %c0_7], %7 {strides = array<i32>} : memref<8x256xf32, #tpu.memory_space<vmem>>, vector<8x256xf32>,
    %c0_i32_8 = arith.constant 0 : i32
    %9 = arith.cmpi eq, %arg1, %c0_i32_8 : i32
    %10 = arith.extui %9 : i1 to i32
    %c0_i32_9 = arith.constant 0 : i32
    %11 = arith.cmpi ne, %10, %c0_i32_9 : i32
    scf.if %11 {
      %c0_10 = arith.constant 0 : index
      %c0_11 = arith.constant 0 : index
      %12 = vector.load %arg10[%c0_10, %c0_11] : memref<8x256xf32, #tpu.memory_space<vmem>>, vector<8x256xf32>
      %c0_12 = arith.constant 0 : index
      %c0_13 = arith.constant 0 : index
      %13 = vector.load %arg4[%c0_12, %c0_13] : memref<1x256xf32, #tpu.memory_space<vmem>>, vector<1x256xf32>
      %14 = vector.broadcast %13 : vector<1x256xf32> to vector<8x256xf32>
      %15 = arith.addf %12, %14 : vector<8x256xf32>
      %cst_14 = arith.constant 0.000000e+00 : f32
      %16 = vector.broadcast %cst_14 : f32 to vector<8x256xf32>
      %17 = arith.maximumf %15, %16 : vector<8x256xf32>
      %18 = arith.truncf %17 : vector<8x256xf32> to vector<8x256xbf16>
      %c0_15 = arith.constant 0 : index
      %c0_16 = arith.constant 0 : index
      %19 = vector.load %arg5[%c0_15, %c0_16] : memref<256x128xbf16, #tpu.memory_space<vmem>>, vector<256x128xbf16>
      %cst_17 = arith.constant dense<0.000000e+00> : vector<8x128xf32>
      %20 = tpu.matmul %18, %19, %cst_17 {dimension_numbers = #tpu.dot_dimension_numbers<[1], [0], [0], [1], [0, 0, 1, 1], [], []>} : vector<8x256xbf16>, vector<256x128xbf16>, vector<8x128xf32> -> vector<8x128xf32>
      %c0_18 = arith.constant 0 : index
      %c0_19 = arith.constant 0 : index
      %21 = vector.load %arg6[%c0_18, %c0_19] : memref<1x128xf32, #tpu.memory_space<vmem>>, vector<1x128xf32>
      %22 = vector.broadcast %21 : vector<1x128xf32> to vector<8x128xf32>
      %23 = arith.addf %20, %22 : vector<8x128xf32>
      %cst_20 = arith.constant 0.000000e+00 : f32
      %24 = vector.broadcast %cst_20 : f32 to vector<8x128xf32>
      %25 = arith.maximumf %23, %24 : vector<8x128xf32>
      %26 = arith.truncf %25 : vector<8x128xf32> to vector<8x128xbf16>
      %c0_21 = arith.constant 0 : index
      %c0_22 = arith.constant 0 : index
      %27 = vector.load %arg7[%c0_21, %c0_22] : memref<128x128xbf16, #tpu.memory_space<vmem>>, vector<128x128xbf16>
      %cst_23 = arith.constant dense<0.000000e+00> : vector<8x128xf32>
      %28 = tpu.matmul %26, %27, %cst_23 {dimension_numbers = #tpu.dot_dimension_numbers<[1], [0], [0], [1], [0, 0, 1, 1], [], []>} : vector<8x128xbf16>, vector<128x128xbf16>, vector<8x128xf32> -> vector<8x128xf32>
      %c0_24 = arith.constant 0 : index
      %c0_25 = arith.constant 0 : index
      %29 = vector.load %arg8[%c0_24, %c0_25] : memref<1x128xf32, #tpu.memory_space<vmem>>, vector<1x128xf32>
      %30 = vector.broadcast %29 : vector<1x128xf32> to vector<8x128xf32>
      %31 = arith.addf %28, %30 : vector<8x128xf32>
      %c0_26 = arith.constant 0 : index
      %c0_27 = arith.constant 0 : index
      %32 = vector.load %arg9[%c0_26, %c0_27] : memref<8x128xf32, #tpu.memory_space<vmem>>, vector<8x128xf32>
      tpu.vector_store %arg9[%c0_26, %c0_27], %31 {strides = array<i32>} : memref<8x128xf32, #tpu.memory_space<vmem>>, vector<8x128xf32>,
    } else {
    }
    return
  }
  func.func @transform_0(%arg0: i32, %arg1: i32) -> (i32, i32) {
    %c0_i32 = arith.constant 0 : i32
    return %arg0, %arg1 : i32, i32
  }
  func.func @transform_1(%arg0: i32, %arg1: i32) -> (i32, i32) {
    %c0_i32 = arith.constant 0 : i32
    %c0_i32_0 = arith.constant 0 : i32
    return %arg1, %c0_i32 : i32, i32
  }
  func.func @transform_2(%arg0: i32, %arg1: i32) -> (i32, i32) {
    %c0_i32 = arith.constant 0 : i32
    %c0_i32_0 = arith.constant 0 : i32
    %c0_i32_1 = arith.constant 0 : i32
    return %c0_i32, %c0_i32_0 : i32, i32
  }
  func.func @transform_3(%arg0: i32, %arg1: i32) -> (i32, i32) {
    %c0_i32 = arith.constant 0 : i32
    %c0_i32_0 = arith.constant 0 : i32
    %c0_i32_1 = arith.constant 0 : i32
    return %c0_i32, %c0_i32_0 : i32, i32
  }
  func.func @transform_4(%arg0: i32, %arg1: i32) -> (i32, i32) {
    %c0_i32 = arith.constant 0 : i32
    %c0_i32_0 = arith.constant 0 : i32
    %c0_i32_1 = arith.constant 0 : i32
    return %c0_i32, %c0_i32_0 : i32, i32
  }
  func.func @transform_5(%arg0: i32, %arg1: i32) -> (i32, i32) {
    %c0_i32 = arith.constant 0 : i32
    %c0_i32_0 = arith.constant 0 : i32
    %c0_i32_1 = arith.constant 0 : i32
    return %c0_i32, %c0_i32_0 : i32, i32
  }
  func.func @transform_6(%arg0: i32, %arg1: i32) -> (i32, i32) {
    %c0_i32 = arith.constant 0 : i32
    %c0_i32_0 = arith.constant 0 : i32
    %c0_i32_1 = arith.constant 0 : i32
    return %c0_i32, %c0_i32_0 : i32, i32
  }
  func.func @transform_7(%arg0: i32, %arg1: i32) -> (i32, i32) {
    %c0_i32 = arith.constant 0 : i32
    %c0_i32_0 = arith.constant 0 : i32
    return %arg0, %c0_i32 : i32, i32
  }
}

</mosaic_0001>

<bundles_post_ra>
// kernel: _forward_impl.2
= control target key start
LH: loop header
LB: loop body
LE: loop exit
PB: predicated region body
PF: predicated region fallthrough
CT: control target
= control target key end

     0   :  { %12 = vsyncpa [#allocation4], 0  ;;  %s1800_s24 = smov [#allocation3]   ;;  %s1965_s0 = inlined_call_operand.vmem [shape: bf16[8,1024], index: 0, kind: input, shape index: {}]   ;;  %s1966_s1 = inlined_call_operand.hbm [shape: bf16[1024,256], index: 1, kind: input, shape index: {}]   ;;  %s1967_s2 = inlined_call_operand.vmem [shape: f32[1,256], index: 2, kind: input, shape index: {}]   ;;  %s1968_s3 = inlined_call_operand.vmem [shape: bf16[256,128], index: 3, kind: input, shape index: {}]   ;;  %s1969_s4 = inlined_call_operand.vmem [shape: f32[1,128], index: 4, kind: input, shape index: {}]   ;;  %s1970_s5 = inlined_call_operand.vmem [shape: bf16[128,128], index: 5, kind: input, shape index: {}]   ;;  %s1971_s6 = inlined_call_operand.vmem [shape: f32[1,128], index: 6, kind: input, shape index: {}]   ;;  %s1972_s7 = inlined_call_operand.vmem [shape: f32[8,128], index: 7, kind: output, shape index: {}]  }
   0x1   :  { %s20_s25 = sshll.u32 %s1800_s24, 4  ;;  %s1776_s28 = scalar_lea.hbm %s1966_s1, 16384  ;;  %s21_s25 = int_to_ptr.vmem [resolvable:$true] %s20_s25 }
   0x2   :  { %p1777_p0 = scmp.ne.s32.totalorder %s1966_s1, %s1776_s28  ;;  %p1780_p1 = scmp.lt.u32.totalorder %s1776_s28, %s1966_s1 }
   0x4   :  { %p1782_p2 = pnand %p1780_p1, %p1777_p0 }
   0x6   :  { %1785 = shalt.err (!%p1782_p2)
}
   0x7   :  { %s1786_s10 = scalar_lea.vmem %s21_s25, 16384  ;;  %p1791_p4 = scmp.lt.s32.totalorder %s21_s25, %s21_s25 }
   0x8   :  { %p1787_p3 = scmp.ne.s32.totalorder %s21_s25, %s1786_s10  ;;  %p1792_p5 = scmp.lt.s32.totalorder %s1786_s10, %s1786_s10 }
   0xa   :  { %p1793_p6 = por %p1792_p5, %p1791_p4 }
   0xc   :  { %p1794_p7 = pnand %p1793_p6, %p1787_p3 }
   0xe   :  { %1797 = shalt.err (!%p1794_p7)
}
   0xf   :  { %s1801_s11 = smov 128   ;;  %s1802_s12 = smov 8  }
  0x10   :  { %26 = dma.hbm_to_vmem [thread:$0]  %s1966_s1, 16384, %s21_s25, [#allocation4], %s1801_s11, %s1801_s11, %s1802_s12  }
  0x11   :  { %1798 = dma.done.wait [#allocation4], 16384  }
  0x12   :  { %1799 = vsyncadd [#allocation4], 4294950912  ;;  %v1552_v0 = vld [vmem:[#allocation3 + $0x4] ss:$8 sps:$4 sm:$0xff]   ;;  %v1556_v2 = vld [vmem:[#allocation3] ss:$8 sps:$4 sm:$0xff]  }
  0x13   :  { %v1554_v1 = vld [vmem:[#allocation3 + $0x104] ss:$8 sps:$4 sm:$0xff]   ;;  %849 = vmatprep.subr.bf16.mxu0 %v1552_v0  ;;  %v1557_v3 = vld [vmem:[#allocation3 + $0x100] ss:$8 sps:$4 sm:$0xff]   ;;  %v1558_v4 = vld [vmem:[#allocation3 + $0x14] ss:$8 sps:$4 sm:$0xff]  }
  0x14   :  { %890 = vmatprep.subr.bf16.mxu1 %v1554_v1  ;;  %850 = vmatpush1.bf16.msra.mxu0 %v1556_v2  ;;  %v1560_v5 = vld [vmem:[#allocation3 + $0x114] ss:$8 sps:$4 sm:$0xff]   ;;  %v1562_v6 = vld [vmem:[#allocation3 + $0x10] ss:$8 sps:$4 sm:$0xff]   ;;  %v1564_v8 = vld [vmem:[#allocation3 + $0x24] ss:$8 sps:$4 sm:$0xff]  }
  0x15   :  { %891 = vmatpush1.bf16.msra.mxu1 %v1557_v3  ;;  %851 = vmatprep.subr.bf16.mxu0 %v1558_v4  ;;  %v1563_v7 = vld [vmem:[#allocation3 + $0x110] ss:$8 sps:$4 sm:$0xff]   ;;  %v1566_v9 = vld [vmem:[#allocation3 + $0x124] ss:$8 sps:$4 sm:$0xff]   ;;  %v1568_v10 = vld [vmem:[#allocation3 + $0x20] ss:$8 sps:$4 sm:$0xff]  }
  0x16   :  { %892 = vmatprep.subr.bf16.mxu1 %v1560_v5  ;;  %v1569_v11 = vld [vmem:[#allocation3 + $0x120] ss:$8 sps:$4 sm:$0xff]   ;;  %v1570_v12 = vld [vmem:[#allocation3 + $0x34] ss:$8 sps:$4 sm:$0xff]   ;;  %v1574_v14 = vld [vmem:[#allocation3 + $0x30] ss:$8 sps:$4 sm:$0xff]  }
  0x17   :  { %v1572_v13 = vld [vmem:[#allocation3 + $0x134] ss:$8 sps:$4 sm:$0xff]   ;;  %v1575_v15 = vld [vmem:[#allocation3 + $0x130] ss:$8 sps:$4 sm:$0xff]   ;;  %v1576_v16 = vld [vmem:[#allocation3 + $0x44] ss:$8 sps:$4 sm:$0xff]  }
  0x18   :  { %852 = vmatpush1.bf16.msra.mxu0 %v1562_v6  ;;  %v1578_v17 = vld [vmem:[#allocation3 + $0x144] ss:$8 sps:$4 sm:$0xff]   ;;  %v1580_v18 = vld [vmem:[#allocation3 + $0x40] ss:$8 sps:$4 sm:$0xff]   ;;  %v1582_v20 = vld [vmem:[#allocation3 + $0x54] ss:$8 sps:$4 sm:$0xff]  }
  0x19   :  { %893 = vmatpush1.bf16.msra.mxu1 %v1563_v7  ;;  %853 = vmatprep.subr.bf16.mxu0 %v1564_v8  ;;  %v1581_v19 = vld [vmem:[#allocation3 + $0x140] ss:$8 sps:$4 sm:$0xff]   ;;  %v1584_v21 = vld [vmem:[#allocation3 + $0x154] ss:$8 sps:$4 sm:$0xff]   ;;  %v1586_v22 = vld [vmem:[#allocation3 + $0x50] ss:$8 sps:$4 sm:$0xff]  }
  0x1a   :  { %894 = vmatprep.subr.bf16.mxu1 %v1566_v9  ;;  %v1587_v23 = vld [vmem:[#allocation3 + $0x150] ss:$8 sps:$4 sm:$0xff]   ;;  %v1588_v24 = vld [vmem:[#allocation3 + $0x64] ss:$8 sps:$4 sm:$0xff]   ;;  %v1592_v26 = vld [vmem:[#allocation3 + $0x60] ss:$8 sps:$4 sm:$0xff]  }
  0x1b   :  { %v1590_v25 = vld [vmem:[#allocation3 + $0x164] ss:$8 sps:$4 sm:$0xff]   ;;  %v1593_v27 = vld [vmem:[#allocation3 + $0x160] ss:$8 sps:$4 sm:$0xff]   ;;  %v1594_v28 = vld [vmem:[#allocation3 + $0x74] ss:$8 sps:$4 sm:$0xff]  }
  0x1c   :  { %854 = vmatpush1.bf16.msra.mxu0 %v1568_v10  ;;  %v1596_v29 = vld [vmem:[#allocation3 + $0x174] ss:$8 sps:$4 sm:$0xff]   ;;  %v1598_v30 = vld [vmem:[#allocation3 + $0x70] ss:$8 sps:$4 sm:$0xff]   ;;  %v1600_v32 = vld [vmem:[#allocation3 + $0x84] ss:$8 sps:$4 sm:$0xff]  }
  0x1d   :  { %895 = vmatpush1.bf16.msra.mxu1 %v1569_v11  ;;  %855 = vmatprep.subr.bf16.mxu0 %v1570_v12  ;;  %v1599_v31 = vld [vmem:[#allocation3 + $0x170] ss:$8 sps:$4 sm:$0xff]   ;;  %v1602_v33 = vld [vmem:[#allocation3 + $0x184] ss:$8 sps:$4 sm:$0xff]   ;;  %v1604_v34 = vld [vmem:[#allocation3 + $0x80] ss:$8 sps:$4 sm:$0xff]  }
  0x1e   :  { %896 = vmatprep.subr.bf16.mxu1 %v1572_v13  ;;  %v1605_v35 = vld [vmem:[#allocation3 + $0x180] ss:$8 sps:$4 sm:$0xff]   ;;  %v1606_v36 = vld [vmem:[#allocation3 + $0x94] ss:$8 sps:$4 sm:$0xff]   ;;  %v1610_v38 = vld [vmem:[#allocation3 + $0x90] ss:$8 sps:$4 sm:$0xff]  }
  0x1f   :  { %v1608_v37 = vld [vmem:[#allocation3 + $0x194] ss:$8 sps:$4 sm:$0xff]   ;;  %v1611_v39 = vld [vmem:[#allocation3 + $0x190] ss:$8 sps:$4 sm:$0xff]   ;;  %v1612_v40 = vld [vmem:[#allocation3 + $0xa4] ss:$8 sps:$4 sm:$0xff]  }
  0x20   :  { %856 = vmatpush1.bf16.msra.mxu0 %v1574_v14  ;;  %v1614_v41 = vld [vmem:[#allocation3 + $0x1a4] ss:$8 sps:$4 sm:$0xff]   ;;  %v1616_v42 = vld [vmem:[#allocation3 + $0xa0] ss:$8 sps:$4 sm:$0xff]   ;;  %v1618_v44 = vld [vmem:[#allocation3 + $0xb4] ss:$8 sps:$4 sm:$0xff]  }
  0x21   :  { %897 = vmatpush1.bf16.msra.mxu1 %v1575_v15  ;;  %857 = vmatprep.subr.bf16.mxu0 %v1576_v16  ;;  %v1617_v43 = vld [vmem:[#allocation3 + $0x1a0] ss:$8 sps:$4 sm:$0xff]   ;;  %v1620_v45 = vld [vmem:[#allocation3 + $0x1b4] ss:$8 sps:$4 sm:$0xff]   ;;  %v1622_v49 = vld [vmem:[#allocation3 + $0xb0] ss:$8 sps:$4 sm:$0xff]  }
  0x22   :  { %898 = vmatprep.subr.bf16.mxu1 %v1578_v17  ;;  %v47_v46 = vld [vmem:[%s1965_s0] sm:$0xff]  ;;  %v48_v48 = vld [vmem:[%s1965_s0 + $0x8] sm:$0xff]  ;;  %v1623_v50 = vld [vmem:[#allocation3 + $0x1b0] ss:$8 sps:$4 sm:$0xff]   ;;  %vm1804_vm0 = vmmov 0  }
  0x23   :  { %v1335_v47 = vcombine.high %v47_v46, %v47_v46  ;;  %v1337_v51 = vcombine.high %v48_v48, %v48_v48  ;;  %v1624_v52 = vld [vmem:[#allocation3 + $0xc4] ss:$8 sps:$4 sm:$0xff]   ;;  %v1628_v54 = vld [vmem:[#allocation3 + $0xc0] ss:$8 sps:$4 sm:$0xff]   ;;  %v1630_v56 = vld [vmem:[#allocation3 + $0xd4] ss:$8 sps:$4 sm:$0xff]   ;;  %v1334_v6 = vcombine.low %v47_v46, %v47_v46  ;;  %v1336_v7 = vcombine.low %v48_v48, %v48_v48 }
  0x24   :  { %858 = vmatpush1.bf16.msra.mxu0 %v1580_v18  ;;  %v1626_v53 = vld [vmem:[#allocation3 + $0x1c4] ss:$8 sps:$4 sm:$0xff]   ;;  %v1629_v55 = vld [vmem:[#allocation3 + $0x1c0] ss:$8 sps:$4 sm:$0xff]   ;;  %v1632_v57 = vld [vmem:[#allocation3 + $0x1d4] ss:$8 sps:$4 sm:$0xff]  }
  0x25   :  { %899 = vmatpush1.bf16.msra.mxu1 %v1581_v19  ;;  %859 = vmatprep.subr.bf16.mxu0 %v1582_v20  ;;  %v1634_v58 = vld [vmem:[#allocation3 + $0xd0] ss:$8 sps:$4 sm:$0xff]   ;;  %v1636_v60 = vld [vmem:[#allocation3 + $0xe4] ss:$8 sps:$4 sm:$0xff]   ;;  %v1640_v62 = vld [vmem:[#allocation3 + $0xe0] ss:$8 sps:$4 sm:$0xff]  }
  0x26   :  { %900 = vmatprep.subr.bf16.mxu1 %v1584_v21  ;;  %881 = vmatprep.mubr.bf16.mxu0 %v1335_v47  ;;  %v1635_v59 = vld [vmem:[#allocation3 + $0x1d0] ss:$8 sps:$4 sm:$0xff]   ;;  %v1638_v61 = vld [vmem:[#allocation3 + $0x1e4] ss:$8 sps:$4 sm:$0xff]   ;;  %v1641_v63 = vld [vmem:[#allocation3 + $0x1e0] ss:$8 sps:$4 sm:$0xff]  }
  0x27   :  { %922 = vmatprep.mubr.bf16.mxu1 %v1337_v51  ;;  %v1642_v0 = vld [vmem:[#allocation3 + $0xf4] ss:$8 sps:$4 sm:$0xff]   ;;  %v1646_v2 = vld [vmem:[#allocation3 + $0xf0] ss:$8 sps:$4 sm:$0xff]   ;;  %v1654_v4 = vld [vmem:[#allocation3 + $0x204] ss:$8 sps:$4 sm:$0xff]  }
  0x28   :  { %860 = vmatpush1.bf16.msra.mxu0 %v1586_v22  ;;  %v1644_v1 = vld [vmem:[#allocation3 + $0x1f4] ss:$8 sps:$4 sm:$0xff]   ;;  %v1647_v3 = vld [vmem:[#allocation3 + $0x1f0] ss:$8 sps:$4 sm:$0xff]   ;;  %v1657_v5 = vld [vmem:[#allocation3 + $0x304] ss:$8 sps:$4 sm:$0xff]  }
  0x29   :  { %901 = vmatpush1.bf16.msra.mxu1 %v1587_v23  ;;  %861 = vmatprep.subr.bf16.mxu0 %v1588_v24  ;;  %v1652_v8 = vld [vmem:[#allocation3 + $0x200] ss:$8 sps:$4 sm:$0xff]   ;;  %v1660_v10 = vld [vmem:[#allocation3 + $0x214] ss:$8 sps:$4 sm:$0xff]   ;;  %v1658_v12 = vld [vmem:[#allocation3 + $0x210] ss:$8 sps:$4 sm:$0xff]  }
  0x2a   :  { %902 = vmatprep.subr.bf16.mxu1 %v1590_v25  ;;  %v1655_v9 = vld [vmem:[#allocation3 + $0x300] ss:$8 sps:$4 sm:$0xff]   ;;  %v1663_v11 = vld [vmem:[#allocation3 + $0x314] ss:$8 sps:$4 sm:$0xff]   ;;  %v1661_v13 = vld [vmem:[#allocation3 + $0x310] ss:$8 sps:$4 sm:$0xff]  }
  0x2b   :  { %v1666_v14 = vld [vmem:[#allocation3 + $0x224] ss:$8 sps:$4 sm:$0xff]   ;;  %v1664_v16 = vld [vmem:[#allocation3 + $0x220] ss:$8 sps:$4 sm:$0xff]   ;;  %v1672_v18 = vld [vmem:[#allocation3 + $0x234] ss:$8 sps:$4 sm:$0xff]  }
  0x2c   :  { %862 = vmatpush1.bf16.msra.mxu0 %v1592_v26  ;;  %v1669_v15 = vld [vmem:[#allocation3 + $0x324] ss:$8 sps:$4 sm:$0xff]   ;;  %v1667_v17 = vld [vmem:[#allocation3 + $0x320] ss:$8 sps:$4 sm:$0xff]   ;;  %v1675_v19 = vld [vmem:[#allocation3 + $0x334] ss:$8 sps:$4 sm:$0xff]  }
  0x2d   :  { %903 = vmatpush1.bf16.msra.mxu1 %v1593_v27  ;;  %863 = vmatprep.subr.bf16.mxu0 %v1594_v28  ;;  %v1670_v20 = vld [vmem:[#allocation3 + $0x230] ss:$8 sps:$4 sm:$0xff]   ;;  %v1678_v22 = vld [vmem:[#allocation3 + $0x244] ss:$8 sps:$4 sm:$0xff]   ;;  %v1676_v24 = vld [vmem:[#allocation3 + $0x240] ss:$8 sps:$4 sm:$0xff]  }
  0x2e   :  { %904 = vmatprep.subr.bf16.mxu1 %v1596_v29  ;;  %v1673_v21 = vld [vmem:[#allocation3 + $0x330] ss:$8 sps:$4 sm:$0xff]   ;;  %v1681_v23 = vld [vmem:[#allocation3 + $0x344] ss:$8 sps:$4 sm:$0xff]   ;;  %v1679_v25 = vld [vmem:[#allocation3 + $0x340] ss:$8 sps:$4 sm:$0xff]  }
  0x2f   :  { %v1684_v26 = vld [vmem:[#allocation3 + $0x254] ss:$8 sps:$4 sm:$0xff]   ;;  %v1682_v28 = vld [vmem:[#allocation3 + $0x250] ss:$8 sps:$4 sm:$0xff]   ;;  %v1717_v51 = vld [vmem:[#allocation3 + $0x3a4] ss:$8 sps:$4 sm:$0xff]  }
  0x30   :  { %864 = vmatpush1.bf16.msra.mxu0 %v1598_v30  ;;  %v1687_v27 = vld [vmem:[#allocation3 + $0x354] ss:$8 sps:$4 sm:$0xff]   ;;  %v1685_v29 = vld [vmem:[#allocation3 + $0x350] ss:$8 sps:$4 sm:$0xff]   ;;  %v1690_v30 = vld [vmem:[#allocation3 + $0x264] ss:$8 sps:$4 sm:$0xff]  }
  0x31   :  { %905 = vmatpush1.bf16.msra.mxu1 %v1599_v31  ;;  %865 = vmatprep.subr.bf16.mxu0 %v1600_v32  ;;  %v1693_v31 = vld [vmem:[#allocation3 + $0x364] ss:$8 sps:$4 sm:$0xff]   ;;  %v1688_v32 = vld [vmem:[#allocation3 + $0x260] ss:$8 sps:$4 sm:$0xff]   ;;  %v1708_v46 = vld [vmem:[#allocation3 + $0x294] ss:$8 sps:$4 sm:$0xff]  }
  0x32   :  { %906 = vmatprep.subr.bf16.mxu1 %v1602_v33  ;;  %v1691_v33 = vld [vmem:[#allocation3 + $0x360] ss:$8 sps:$4 sm:$0xff]   ;;  %v1711_v47 = vld [vmem:[#allocation3 + $0x394] ss:$8 sps:$4 sm:$0xff]   ;;  %v1706_v48 = vld [vmem:[#allocation3 + $0x290] ss:$8 sps:$4 sm:$0xff]  }
  0x34   :  { %866 = vmatpush1.bf16.msra.mxu0 %v1604_v34  ;;  %v1866_v34 = vld [vmem:[%s1965_s0 + $0x10] sm:$0xff] }
  0x35   :  { %907 = vmatpush1.bf16.msra.mxu1 %v1605_v35  ;;  %867 = vmatprep.subr.bf16.mxu0 %v1606_v36  ;;  %v1871_v35 = vld [vmem:[%s1965_s0 + $0x18] sm:$0xff] }
  0x36   :  { %908 = vmatprep.subr.bf16.mxu1 %v1608_v37  ;;  %v1696_v36 = vld [vmem:[#allocation3 + $0x274] ss:$8 sps:$4 sm:$0xff]  }
  0x37   :  { %v1699_v37 = vld [vmem:[#allocation3 + $0x374] ss:$8 sps:$4 sm:$0xff]  }
  0x38   :  { %868 = vmatpush1.bf16.msra.mxu0 %v1610_v38  ;;  %v1339_v38 = vcombine.high %v1866_v34, %v1866_v34 }
  0x39   :  { %909 = vmatpush1.bf16.msra.mxu1 %v1611_v39  ;;  %869 = vmatprep.subr.bf16.mxu0 %v1612_v40  ;;  %v1341_v39 = vcombine.high %v1871_v35, %v1871_v35  ;;  %v1694_v40 = vld [vmem:[#allocation3 + $0x270] ss:$8 sps:$4 sm:$0xff]  }
  0x3a   :  { %910 = vmatprep.subr.bf16.mxu1 %v1614_v41  ;;  %v1697_v41 = vld [vmem:[#allocation3 + $0x370] ss:$8 sps:$4 sm:$0xff]  }
  0x3c   :  { %870 = vmatpush1.bf16.msra.mxu0 %v1616_v42  ;;  %v1702_v42 = vld [vmem:[#allocation3 + $0x284] ss:$8 sps:$4 sm:$0xff]  }
  0x3d   :  { %911 = vmatpush1.bf16.msra.mxu1 %v1617_v43  ;;  %871 = vmatprep.subr.bf16.mxu0 %v1618_v44  ;;  %v1705_v43 = vld [vmem:[#allocation3 + $0x384] ss:$8 sps:$4 sm:$0xff]   ;;  %v1700_v44 = vld [vmem:[#allocation3 + $0x280] ss:$8 sps:$4 sm:$0xff]  }
  0x3e   :  { %912 = vmatprep.subr.bf16.mxu1 %v1620_v45  ;;  %v1703_v45 = vld [vmem:[#allocation3 + $0x380] ss:$8 sps:$4 sm:$0xff]  }
  0x40   :  { %872 = vmatpush1.bf16.msra.mxu0 %v1622_v49  ;;  %v1709_v49 = vld [vmem:[#allocation3 + $0x390] ss:$8 sps:$4 sm:$0xff]  }
  0x41   :  { %913 = vmatpush1.bf16.msra.mxu1 %v1623_v50  ;;  %873 = vmatprep.subr.bf16.mxu0 %v1624_v52  ;;  %v1714_v50 = vld [vmem:[#allocation3 + $0x2a4] ss:$8 sps:$4 sm:$0xff]   ;;  %v1712_v52 = vld [vmem:[#allocation3 + $0x2a0] ss:$8 sps:$4 sm:$0xff]  }
  0x42   :  { %914 = vmatprep.subr.bf16.mxu1 %v1626_v53  ;;  %v1715_v53 = vld [vmem:[#allocation3 + $0x3a0] ss:$8 sps:$4 sm:$0xff]  }
  0x44   :  { %874 = vmatpush1.bf16.msra.mxu0 %v1628_v54  ;;  %v1720_v54 = vld [vmem:[#allocation3 + $0x2b4] ss:$8 sps:$4 sm:$0xff]  }
  0x45   :  { %915 = vmatpush1.bf16.msra.mxu1 %v1629_v55  ;;  %875 = vmatprep.subr.bf16.mxu0 %v1630_v56  ;;  %v1723_v55 = vld [vmem:[#allocation3 + $0x3b4] ss:$8 sps:$4 sm:$0xff]   ;;  %v1718_v56 = vld [vmem:[#allocation3 + $0x2b0] ss:$8 sps:$4 sm:$0xff]  }
  0x46   :  { %916 = vmatprep.subr.bf16.mxu1 %v1632_v57  ;;  %v1721_v57 = vld [vmem:[#allocation3 + $0x3b0] ss:$8 sps:$4 sm:$0xff]  }
  0x48   :  { %876 = vmatpush1.bf16.msra.mxu0 %v1634_v58  ;;  %v1726_v58 = vld [vmem:[#allocation3 + $0x2c4] ss:$8 sps:$4 sm:$0xff]  }
  0x49   :  { %917 = vmatpush1.bf16.msra.mxu1 %v1635_v59  ;;  %877 = vmatprep.subr.bf16.mxu0 %v1636_v60  ;;  %v1729_v59 = vld [vmem:[#allocation3 + $0x3c4] ss:$8 sps:$4 sm:$0xff]   ;;  %v1724_v60 = vld [vmem:[#allocation3 + $0x2c0] ss:$8 sps:$4 sm:$0xff]  }
  0x4a   :  { %918 = vmatprep.subr.bf16.mxu1 %v1638_v61  ;;  %v1727_v61 = vld [vmem:[#allocation3 + $0x3c0] ss:$8 sps:$4 sm:$0xff]  }
  0x4c   :  { %878 = vmatpush1.bf16.msra.mxu0 %v1640_v62  ;;  %v1732_v62 = vld [vmem:[#allocation3 + $0x2d4] ss:$8 sps:$4 sm:$0xff]  }
  0x4d   :  { %919 = vmatpush1.bf16.msra.mxu1 %v1641_v63  ;;  %879 = vmatprep.subr.bf16.mxu0 %v1642_v0  ;;  %v1735_v63 = vld [vmem:[#allocation3 + $0x3d4] ss:$8 sps:$4 sm:$0xff]   ;;  %v1730_v0 = vld [vmem:[#allocation3 + $0x2d0] ss:$8 sps:$4 sm:$0xff]  }
  0x4e   :  { %920 = vmatprep.subr.bf16.mxu1 %v1644_v1  ;;  %v1733_v1 = vld [vmem:[#allocation3 + $0x3d0] ss:$8 sps:$4 sm:$0xff]  }
  0x50   :  { %880 = vmatpush1.bf16.msra.mxu0 %v1646_v2  ;;  %v1738_v2 = vld [vmem:[#allocation3 + $0x2e4] ss:$8 sps:$4 sm:$0xff]  }
  0x51   :  { %921 = vmatpush1.bf16.msra.mxu1 %v1647_v3  ;;  %931 = vmatprep.subr.bf16.mxu0 %v1654_v4  ;;  %v1741_v3 = vld [vmem:[#allocation3 + $0x3e4] ss:$8 sps:$4 sm:$0xff]   ;;  %v1736_v4 = vld [vmem:[#allocation3 + $0x2e0] ss:$8 sps:$4 sm:$0xff]  }
  0x52   :  { %972 = vmatprep.subr.bf16.mxu1 %v1657_v5  ;;  %v1739_v5 = vld [vmem:[#allocation3 + $0x3e0] ss:$8 sps:$4 sm:$0xff]  }
  0x53   :  { %882 = vmatmul.mubr.bf16.vlgmr.msra.gmra.mrb[0].mxu0 %v1334_v6  ;;  %v1744_v6 = vld [vmem:[#allocation3 + $0x2f4] ss:$8 sps:$4 sm:$0xff]  }
  0x54   :  { %923 = vmatmul.mubr.bf16.vlgmr.msra.gmra.mrb[0].mxu1 %v1336_v7  ;;  %932 = vmatpush1.bf16.msra.mxu0 %v1652_v8  ;;  %v1747_v7 = vld [vmem:[#allocation3 + $0x3f4] ss:$8 sps:$4 sm:$0xff]   ;;  %v1742_v8 = vld [vmem:[#allocation3 + $0x2f0] ss:$8 sps:$4 sm:$0xff]  }
  0x55   :  { %973 = vmatpush1.bf16.msra.mxu1 %v1655_v9  ;;  %933 = vmatprep.subr.bf16.mxu0 %v1660_v10  ;;  %v1745_v9 = vld [vmem:[#allocation3 + $0x3f0] ss:$8 sps:$4 sm:$0xff]   ;;  %v1338_v10 = vcombine.low %v1866_v34, %v1866_v34  ;;  %v1773_v34 = vld [vmem:[%s1970_s5 + $0x28] sm:$0xff]  }
  0x56   :  { %974 = vmatprep.subr.bf16.mxu1 %v1663_v11  ;;  %963 = vmatprep.mubr.bf16.mxu0 %v1339_v38  ;;  %v1340_v11 = vcombine.low %v1871_v35, %v1871_v35 }
  0x57   :  { %1004 = vmatprep.mubr.bf16.mxu1 %v1341_v39 }
  0x58   :  { %934 = vmatpush1.bf16.msra.mxu0 %v1658_v12  ;;  %v1752_v12 = vld [vmem:[%s1968_s3 + $0x40] sm:$0xff]  }
  0x59   :  { %975 = vmatpush1.bf16.msra.mxu1 %v1661_v13  ;;  %935 = vmatprep.subr.bf16.mxu0 %v1666_v14  ;;  %v1753_v13 = vld [vmem:[%s1968_s3] sm:$0xff]   ;;  %v1754_v14 = vld [vmem:[%s1968_s3 + $0x48] sm:$0xff]  }
  0x5a   :  { %976 = vmatprep.subr.bf16.mxu1 %v1669_v15  ;;  %v1755_v15 = vld [vmem:[%s1968_s3 + $0x8] sm:$0xff]  }
  0x5c   :  { %936 = vmatpush1.bf16.msra.mxu0 %v1664_v16  ;;  %v1756_v16 = vld [vmem:[%s1968_s3 + $0x50] sm:$0xff]  }
  0x5d   :  { %977 = vmatpush1.bf16.msra.mxu1 %v1667_v17  ;;  %937 = vmatprep.subr.bf16.mxu0 %v1672_v18  ;;  %v1757_v17 = vld [vmem:[%s1968_s3 + $0x10] sm:$0xff]   ;;  %v1758_v18 = vld [vmem:[%s1968_s3 + $0x58] sm:$0xff]  }
  0x5e   :  { %978 = vmatprep.subr.bf16.mxu1 %v1675_v19  ;;  %v1759_v19 = vld [vmem:[%s1968_s3 + $0x18] sm:$0xff]  }
  0x60   :  { %938 = vmatpush1.bf16.msra.mxu0 %v1670_v20  ;;  %v1760_v20 = vld [vmem:[%s1968_s3 + $0x60] sm:$0xff]  }
  0x61   :  { %979 = vmatpush1.bf16.msra.mxu1 %v1673_v21  ;;  %939 = vmatprep.subr.bf16.mxu0 %v1678_v22  ;;  %v1761_v21 = vld [vmem:[%s1968_s3 + $0x20] sm:$0xff]   ;;  %v1762_v22 = vld [vmem:[%s1968_s3 + $0x68] sm:$0xff]  }
  0x62   :  { %980 = vmatprep.subr.bf16.mxu1 %v1681_v23  ;;  %v1763_v23 = vld [vmem:[%s1968_s3 + $0x28] sm:$0xff]  }
  0x64   :  { %940 = vmatpush1.bf16.msra.mxu0 %v1676_v24  ;;  %v1764_v24 = vld [vmem:[%s1968_s3 + $0x70] sm:$0xff]  }
  0x65   :  { %981 = vmatpush1.bf16.msra.mxu1 %v1679_v25  ;;  %941 = vmatprep.subr.bf16.mxu0 %v1684_v26  ;;  %v1765_v25 = vld [vmem:[%s1968_s3 + $0x30] sm:$0xff]   ;;  %v1766_v26 = vld [vmem:[%s1968_s3 + $0x78] sm:$0xff]  }
  0x66   :  { %982 = vmatprep.subr.bf16.mxu1 %v1687_v27  ;;  %v1767_v27 = vld [vmem:[%s1968_s3 + $0x38] sm:$0xff]  }
  0x68   :  { %942 = vmatpush1.bf16.msra.mxu0 %v1682_v28  ;;  %v1768_v28 = vld [vmem:[%s1970_s5] sm:$0xff]  }
  0x69   :  { %983 = vmatpush1.bf16.msra.mxu1 %v1685_v29  ;;  %943 = vmatprep.subr.bf16.mxu0 %v1690_v30  ;;  %v1803_v29 = vmov 0.0   ;;  %v1769_v30 = vld [vmem:[%s1970_s5 + $0x8] sm:$0xff]  }
  0x6a   :  { %984 = vmatprep.subr.bf16.mxu1 %v1693_v31  ;;  %v1770_v31 = vld [vmem:[%s1970_s5 + $0x10] sm:$0xff]  }
  0x6c   :  { %944 = vmatpush1.bf16.msra.mxu0 %v1688_v32  ;;  %v1771_v32 = vld [vmem:[%s1970_s5 + $0x18] sm:$0xff]  }
  0x6d   :  { %985 = vmatpush1.bf16.msra.mxu1 %v1691_v33  ;;  %945 = vmatprep.subr.bf16.mxu0 %v1696_v36  ;;  %v1772_v33 = vld [vmem:[%s1970_s5 + $0x20] sm:$0xff]  }
  0x6e   :  { %986 = vmatprep.subr.bf16.mxu1 %v1699_v37 }
  0x70   :  { %946 = vmatpush1.bf16.msra.mxu0 %v1694_v40 }
  0x71   :  { %987 = vmatpush1.bf16.msra.mxu1 %v1697_v41  ;;  %947 = vmatprep.subr.bf16.mxu0 %v1702_v42 }
  0x72   :  { %988 = vmatprep.subr.bf16.mxu1 %v1705_v43 }
  0x74   :  { %948 = vmatpush1.bf16.msra.mxu0 %v1700_v44 }
  0x75   :  { %989 = vmatpush1.bf16.msra.mxu1 %v1703_v45  ;;  %949 = vmatprep.subr.bf16.mxu0 %v1708_v46  ;;  %v1024_v45 = vlaneseq }
  0x76   :  { %990 = vmatprep.subr.bf16.mxu1 %v1711_v47 }
  0x77   :  { %v1025_v46 = vshrl.u32 %v1024_v45, 7 }
  0x78   :  { %950 = vmatpush1.bf16.msra.mxu0 %v1706_v48  ;;  %v1022_v48 = vld [vmem:[%s1967_s2] sm:$0x3] }
  0x79   :  { %991 = vmatpush1.bf16.msra.mxu1 %v1709_v49  ;;  %951 = vmatprep.subr.bf16.mxu0 %v1714_v50  ;;  %v1026_v47 = vsub.s32 0, %v1025_v46  ;;  %v1030_v49 = vsub.s32 1, %v1025_v46 }
  0x7a   :  { %992 = vmatprep.subr.bf16.mxu1 %v1717_v51 }
  0x7c   :  { %952 = vmatpush1.bf16.msra.mxu0 %v1712_v52 }
  0x7d   :  { %993 = vmatpush1.bf16.msra.mxu1 %v1715_v53  ;;  %953 = vmatprep.subr.bf16.mxu0 %v1720_v54  ;;  %v1027_v53 = vrot.slane %v1022_v48, %v1026_v47 }
  0x7e   :  { %994 = vmatprep.subr.bf16.mxu1 %v1723_v55 }
  0x80   :  { %954 = vmatpush1.bf16.msra.mxu0 %v1718_v56 }
  0x81   :  { %995 = vmatpush1.bf16.msra.mxu1 %v1721_v57  ;;  %955 = vmatprep.subr.bf16.mxu0 %v1726_v58  ;;  %v1031_v57 = vrot.slane %v1022_v48, %v1030_v49 }
  0x82   :  { %996 = vmatprep.subr.bf16.mxu1 %v1729_v59 }
  0x84   :  { %956 = vmatpush1.bf16.msra.mxu0 %v1724_v60 }
  0x85   :  { %997 = vmatpush1.bf16.msra.mxu1 %v1727_v61  ;;  %957 = vmatprep.subr.bf16.mxu0 %v1732_v62 }
  0x86   :  { %998 = vmatprep.subr.bf16.mxu1 %v1735_v63 }
  0x88   :  { %958 = vmatpush1.bf16.msra.mxu0 %v1730_v0 }
  0x89   :  { %999 = vmatpush1.bf16.msra.mxu1 %v1733_v1  ;;  %959 = vmatprep.subr.bf16.mxu0 %v1738_v2 }
  0x8a   :  { %1000 = vmatprep.subr.bf16.mxu1 %v1741_v3 }
  0x8c   :  { %960 = vmatpush1.bf16.msra.mxu0 %v1736_v4 }
  0x8d   :  { %1001 = vmatpush1.bf16.msra.mxu1 %v1739_v5  ;;  %961 = vmatprep.subr.bf16.mxu0 %v1744_v6  ;;  %v1774_v6 = vld [vmem:[%s1970_s5 + $0x30] sm:$0xff]  }
  0x8e   :  { %1002 = vmatprep.subr.bf16.mxu1 %v1747_v7  ;;  %v1775_v7 = vld [vmem:[%s1970_s5 + $0x38] sm:$0xff]  }
  0x90   :  { %962 = vmatpush1.bf16.msra.mxu0 %v1742_v8 }
  0x91   :  { %1003 = vmatpush1.bf16.msra.mxu1 %v1745_v9  ;;  %1496 = vmatprep.subr.bf16.mxu0 %v1752_v12  ;;  %v1470_v9 = vld [vmem:[%s1969_s4] ss:$0 sm:$0xff] }
  0x92   :  { %1527 = vmatprep.subr.bf16.mxu1 %v1803_v29 }
  0x93   :  { %964 = vmatmul.mubr.bf16.vlgmr.msra.gmra.mrb[4].mxu0 %v1338_v10 }
  0x94   :  { %1005 = vmatmul.mubr.bf16.vlgmr.msra.gmra.mrb[4].mxu1 %v1340_v11  ;;  %1497 = vmatpush3.bf16.msra.mxu0 %v1753_v13 }
  0x95   :  { %1498 = vmatprep.subr.bf16.mxu0 %v1754_v14  ;;  %1528 = vmatpush3.bf16.msra.mxu1 %v1768_v28 }
  0x96   :  { %1529 = vmatprep.subr.bf16.mxu1 %v1803_v29  ;;  %1543 = vmatprep.mubr.msk.bf16.mxu1 %vm1804_vm0, %v1803_v29 }
  0x98   :  { %1499 = vmatpush3.bf16.msra.mxu0 %v1755_v15 }
  0x99   :  { %1500 = vmatprep.subr.bf16.mxu0 %v1756_v16  ;;  %1530 = vmatpush3.bf16.msra.mxu1 %v1769_v30 }
  0x9a   :  { %1531 = vmatprep.subr.bf16.mxu1 %v1803_v29 }
  0x9c   :  { %1501 = vmatpush3.bf16.msra.mxu0 %v1757_v17  ;;  %v1487_v17 = vld [vmem:[%s1971_s6] ss:$0 sm:$0xff] }
  0x9d   :  { %1502 = vmatprep.subr.bf16.mxu0 %v1758_v18  ;;  %1532 = vmatpush3.bf16.msra.mxu1 %v1770_v31 }
  0x9e   :  { %1533 = vmatprep.subr.bf16.mxu1 %v1803_v29 }
  0xa0   :  { %1503 = vmatpush3.bf16.msra.mxu0 %v1759_v19 }
  0xa1   :  { %1504 = vmatprep.subr.bf16.mxu0 %v1760_v20  ;;  %1534 = vmatpush3.bf16.msra.mxu1 %v1771_v32 }
  0xa2   :  { %1535 = vmatprep.subr.bf16.mxu1 %v1803_v29 }
  0xa4   :  { %1505 = vmatpush3.bf16.msra.mxu0 %v1761_v21 }
  0xa5   :  { %1506 = vmatprep.subr.bf16.mxu0 %v1762_v22  ;;  %1536 = vmatpush3.bf16.msra.mxu1 %v1772_v33 }
  0xa6   :  { %1537 = vmatprep.subr.bf16.mxu1 %v1803_v29 }
  0xa8   :  { %1507 = vmatpush3.bf16.msra.mxu0 %v1763_v23 }
  0xa9   :  { %1508 = vmatprep.subr.bf16.mxu0 %v1764_v24  ;;  %1538 = vmatpush3.bf16.msra.mxu1 %v1773_v34 }
  0xaa   :  { %1539 = vmatprep.subr.bf16.mxu1 %v1803_v29 }
  0xac   :  { %1509 = vmatpush3.bf16.msra.mxu0 %v1765_v25 }
  0xad   :  { %1510 = vmatprep.subr.bf16.mxu0 %v1766_v26  ;;  %1540 = vmatpush3.bf16.msra.mxu1 %v1774_v6 }
  0xae   :  { %1541 = vmatprep.subr.bf16.mxu1 %v1803_v29 }
  0xb0   :  { %1511 = vmatpush3.bf16.msra.mxu0 %v1767_v27 }
  0xb1   :  { %1542 = vmatpush3.bf16.msra.mxu1 %v1775_v7 }
 0x126   :  { %v883_v35 = vpop.f32.mrb[0].mxu0 }
 0x127   :  { %v924_v36 = vpop.f32.mrb[0].mxu1  ;;  %v885_v38 = vpop.f32.mrb[1].mxu0 }
 0x128   :  { %v925_v37 = vadd.f32 %v924_v36, %v883_v35  ;;  %v926_v39 = vpop.f32.mrb[1].mxu1  ;;  %v887_v41 = vpop.f32.mrb[2].mxu0 }
 0x129   :  { %v927_v40 = vadd.f32 %v926_v39, %v885_v38  ;;  %v928_v42 = vpop.f32.mrb[2].mxu1  ;;  %v888_v43 = vpop.f32.mrb[3].mxu0 }
 0x12a   :  { %v929_v44 = vpop.f32.mrb[3].mxu1 }
 0x166   :  { %v965_v50 = vpop.f32.mrb[4].mxu0 }
 0x167   :  { %v1006_v51 = vpop.f32.mrb[4].mxu1  ;;  %v966_v52 = vadd.f32 %v965_v50, %v925_v37  ;;  %v967_v54 = vpop.f32.mrb[5].mxu0 }
 0x168   :  { %v1008_v55 = vpop.f32.mrb[5].mxu1  ;;  %v968_v56 = vadd.f32 %v967_v54, %v927_v40  ;;  %v969_v58 = vpop.f32.mrb[6].mxu0 }
 0x169   :  { %v1010_v59 = vpop.f32.mrb[6].mxu1  ;;  %v1007_v60 = vadd.f32 %v1006_v51, %v966_v52  ;;  %v970_v61 = vpop.f32.mrb[7].mxu0 }
 0x16a   :  { %v1011_v62 = vpop.f32.mrb[7].mxu1  ;;  %v1009_v63 = vadd.f32 %v1008_v55, %v968_v56 }
 0x16b   :  { %v1034_v0 = vadd.f32 %v1027_v53, %v1007_v60 }
 0x16c   :  { %v1035_v1 = vadd.f32 %v1031_v57, %v1009_v63 }
 0x16d   :  { %v1036_v2 = vmax.f32 %v1034_v0, 0.0 }
 0x16e   :  { %v1037_v3 = vmax.f32 %v1035_v1, 0.0 }
 0x16f   :  { %v1038_v5 = vpack.c.bf16 %v1036_v2, %v1036_v2 }
 0x170   :  { %v1039_v4 = vpack.c.bf16 %v1037_v3, %v1037_v3 }
 0x172   :  { %1207 = vmatprep.mubr.bf16.mxu0 %v1039_v4 }
 0x173   :  { %1208 = vmatmul.mubr.bf16.vlgmr.msra.gmra.mrb[8].mxu0 %v1038_v5 }
 0x246   :  { %v1512_v8 = vpop.f32.mrb[8].mxu0 }
 0x247   :  { %v1513_v10 = vpop.f32.mrb[9].mxu0 }
 0x248   :  { %v1514_v11 = vadd.f32 %v1513_v10, %v1512_v8  ;;  %v1515_v12 = vpop.f32.mrb[10].mxu0 }
 0x249   :  { %v1516_v13 = vpop.f32.mrb[11].mxu0 }
 0x24a   :  { %v1210_v14 = vadd.f32 %v1514_v11, %v1470_v9 }
 0x24c   :  { %v1215_v15 = vmax.f32 %v1210_v14, 0.0 }
 0x24e   :  { %v1216_v16 = vpack.c.bf16 %v1215_v15, %v1215_v15 }
 0x250   :  { %1544 = vmatmul.mubr.bf16.vlgmr.msra.gmra.mrb[8].mxu1 %v1216_v16 }
 0x323   :  { %v1322_v18 = vpop.f32.mrb[8].mxu1 }
 0x324   :  { %v1323_v19 = vadd.f32 %v1487_v17, %v1322_v18  ;;  %v1545_v20 = vpop.f32.mrb[9].mxu1 }
 0x325   :  { %v1325_v21 = vpop.f32.mrb[10].mxu1 }
 0x326   :  { %1328 = vst [vmem:[%s1972_s7] sm:$0xff] %v1323_v19  ;;  %v1546_v22 = vpop.f32.mrb[11].mxu1 }
 0x327   :  { %1333 = vsyncpa [#allocation4], 1 }

// kernel: _forward_impl.3
= control target key start
LH: loop header
LB: loop body
LE: loop exit
PB: predicated region body
PF: predicated region fallthrough
CT: control target
= control target key end

     0   :  { %vm1759_vm0 = vmmov 0   ;;  %s2301_s1 = inlined_call_operand.vmem [shape: bf16[1024,256], index: 1, kind: input, shape index: {}]   ;;  %s2302_s0 = inlined_call_operand.vmem [shape: bf16[8,1024], index: 0, kind: input, shape index: {}]   ;;  %s2303_s3 = inlined_call_operand.vmem [shape: bf16[256,128], index: 3, kind: input, shape index: {}]   ;;  %s2304_s5 = inlined_call_operand.vmem [shape: bf16[128,128], index: 5, kind: input, shape index: {}]   ;;  %s2305_s2 = inlined_call_operand.vmem [shape: f32[1,256], index: 2, kind: input, shape index: {}]   ;;  %s2306_s4 = inlined_call_operand.vmem [shape: f32[1,128], index: 4, kind: input, shape index: {}]   ;;  %s2307_s6 = inlined_call_operand.vmem [shape: f32[1,128], index: 6, kind: input, shape index: {}]   ;;  %s2308_s7 = inlined_call_operand.vmem [shape: f32[8,128], index: 7, kind: output, shape index: {}]  }
   0x1   :  { %v1534_v0 = vld [vmem:[%s2301_s1 + $0x4] ss:$8 sps:$4 sm:$0xff]   ;;  %v1538_v2 = vld [vmem:[%s2301_s1] ss:$8 sps:$4 sm:$0xff]   ;;  %v1540_v4 = vld [vmem:[%s2301_s1 + $0x14] ss:$8 sps:$4 sm:$0xff]  }
   0x2   :  { %v1536_v1 = vld [vmem:[%s2301_s1 + $0x104] ss:$8 sps:$4 sm:$0xff]   ;;  %835 = vmatprep.subr.bf16.mxu0 %v1534_v0  ;;  %v1539_v3 = vld [vmem:[%s2301_s1 + $0x100] ss:$8 sps:$4 sm:$0xff]   ;;  %v1542_v5 = vld [vmem:[%s2301_s1 + $0x114] ss:$8 sps:$4 sm:$0xff]  }
   0x3   :  { %876 = vmatprep.subr.bf16.mxu1 %v1536_v1  ;;  %836 = vmatpush1.bf16.msra.mxu0 %v1538_v2  ;;  %v1544_v6 = vld [vmem:[%s2301_s1 + $0x10] ss:$8 sps:$4 sm:$0xff]   ;;  %v1546_v8 = vld [vmem:[%s2301_s1 + $0x24] ss:$8 sps:$4 sm:$0xff]   ;;  %v1550_v10 = vld [vmem:[%s2301_s1 + $0x20] ss:$8 sps:$4 sm:$0xff]  }
   0x4   :  { %877 = vmatpush1.bf16.msra.mxu1 %v1539_v3  ;;  %837 = vmatprep.subr.bf16.mxu0 %v1540_v4  ;;  %v1545_v7 = vld [vmem:[%s2301_s1 + $0x110] ss:$8 sps:$4 sm:$0xff]   ;;  %v1548_v9 = vld [vmem:[%s2301_s1 + $0x124] ss:$8 sps:$4 sm:$0xff]   ;;  %v1551_v11 = vld [vmem:[%s2301_s1 + $0x120] ss:$8 sps:$4 sm:$0xff]  }
   0x5   :  { %878 = vmatprep.subr.bf16.mxu1 %v1542_v5  ;;  %v1552_v12 = vld [vmem:[%s2301_s1 + $0x34] ss:$8 sps:$4 sm:$0xff]   ;;  %v1556_v14 = vld [vmem:[%s2301_s1 + $0x30] ss:$8 sps:$4 sm:$0xff]   ;;  %v1558_v16 = vld [vmem:[%s2301_s1 + $0x44] ss:$8 sps:$4 sm:$0xff]  }
   0x6   :  { %v1554_v13 = vld [vmem:[%s2301_s1 + $0x134] ss:$8 sps:$4 sm:$0xff]   ;;  %v1557_v15 = vld [vmem:[%s2301_s1 + $0x130] ss:$8 sps:$4 sm:$0xff]   ;;  %v1560_v17 = vld [vmem:[%s2301_s1 + $0x144] ss:$8 sps:$4 sm:$0xff]  }
   0x7   :  { %838 = vmatpush1.bf16.msra.mxu0 %v1544_v6  ;;  %v1562_v18 = vld [vmem:[%s2301_s1 + $0x40] ss:$8 sps:$4 sm:$0xff]   ;;  %v1564_v20 = vld [vmem:[%s2301_s1 + $0x54] ss:$8 sps:$4 sm:$0xff]   ;;  %v1568_v22 = vld [vmem:[%s2301_s1 + $0x50] ss:$8 sps:$4 sm:$0xff]  }
   0x8   :  { %879 = vmatpush1.bf16.msra.mxu1 %v1545_v7  ;;  %839 = vmatprep.subr.bf16.mxu0 %v1546_v8  ;;  %v1563_v19 = vld [vmem:[%s2301_s1 + $0x140] ss:$8 sps:$4 sm:$0xff]   ;;  %v1566_v21 = vld [vmem:[%s2301_s1 + $0x154] ss:$8 sps:$4 sm:$0xff]   ;;  %v1569_v23 = vld [vmem:[%s2301_s1 + $0x150] ss:$8 sps:$4 sm:$0xff]  }
   0x9   :  { %880 = vmatprep.subr.bf16.mxu1 %v1548_v9  ;;  %v1570_v24 = vld [vmem:[%s2301_s1 + $0x64] ss:$8 sps:$4 sm:$0xff]   ;;  %v1574_v26 = vld [vmem:[%s2301_s1 + $0x60] ss:$8 sps:$4 sm:$0xff]   ;;  %v1576_v28 = vld [vmem:[%s2301_s1 + $0x74] ss:$8 sps:$4 sm:$0xff]  }
   0xa   :  { %v1572_v25 = vld [vmem:[%s2301_s1 + $0x164] ss:$8 sps:$4 sm:$0xff]   ;;  %v1575_v27 = vld [vmem:[%s2301_s1 + $0x160] ss:$8 sps:$4 sm:$0xff]   ;;  %v1578_v29 = vld [vmem:[%s2301_s1 + $0x174] ss:$8 sps:$4 sm:$0xff]  }
   0xb   :  { %840 = vmatpush1.bf16.msra.mxu0 %v1550_v10  ;;  %v1580_v30 = vld [vmem:[%s2301_s1 + $0x70] ss:$8 sps:$4 sm:$0xff]   ;;  %v1582_v32 = vld [vmem:[%s2301_s1 + $0x84] ss:$8 sps:$4 sm:$0xff]   ;;  %v1586_v34 = vld [vmem:[%s2301_s1 + $0x80] ss:$8 sps:$4 sm:$0xff]  }
   0xc   :  { %881 = vmatpush1.bf16.msra.mxu1 %v1551_v11  ;;  %841 = vmatprep.subr.bf16.mxu0 %v1552_v12  ;;  %v1581_v31 = vld [vmem:[%s2301_s1 + $0x170] ss:$8 sps:$4 sm:$0xff]   ;;  %v1584_v33 = vld [vmem:[%s2301_s1 + $0x184] ss:$8 sps:$4 sm:$0xff]   ;;  %v1587_v35 = vld [vmem:[%s2301_s1 + $0x180] ss:$8 sps:$4 sm:$0xff]  }
   0xd   :  { %882 = vmatprep.subr.bf16.mxu1 %v1554_v13  ;;  %v1588_v36 = vld [vmem:[%s2301_s1 + $0x94] ss:$8 sps:$4 sm:$0xff]   ;;  %v1592_v38 = vld [vmem:[%s2301_s1 + $0x90] ss:$8 sps:$4 sm:$0xff]   ;;  %v1594_v40 = vld [vmem:[%s2301_s1 + $0xa4] ss:$8 sps:$4 sm:$0xff]  }
   0xe   :  { %v1590_v37 = vld [vmem:[%s2301_s1 + $0x194] ss:$8 sps:$4 sm:$0xff]   ;;  %v1593_v39 = vld [vmem:[%s2301_s1 + $0x190] ss:$8 sps:$4 sm:$0xff]   ;;  %v1596_v41 = vld [vmem:[%s2301_s1 + $0x1a4] ss:$8 sps:$4 sm:$0xff]  }
   0xf   :  { %842 = vmatpush1.bf16.msra.mxu0 %v1556_v14  ;;  %v1598_v42 = vld [vmem:[%s2301_s1 + $0xa0] ss:$8 sps:$4 sm:$0xff]   ;;  %v1600_v44 = vld [vmem:[%s2301_s1 + $0xb4] ss:$8 sps:$4 sm:$0xff]   ;;  %v1604_v49 = vld [vmem:[%s2301_s1 + $0xb0] ss:$8 sps:$4 sm:$0xff]  }
  0x10   :  { %883 = vmatpush1.bf16.msra.mxu1 %v1557_v15  ;;  %843 = vmatprep.subr.bf16.mxu0 %v1558_v16  ;;  %v1599_v43 = vld [vmem:[%s2301_s1 + $0x1a0] ss:$8 sps:$4 sm:$0xff]   ;;  %v1602_v45 = vld [vmem:[%s2301_s1 + $0x1b4] ss:$8 sps:$4 sm:$0xff]   ;;  %v1605_v50 = vld [vmem:[%s2301_s1 + $0x1b0] ss:$8 sps:$4 sm:$0xff]  }
  0x11   :  { %884 = vmatprep.subr.bf16.mxu1 %v1560_v17  ;;  %v33_v46 = vld [vmem:[%s2302_s0] sm:$0xff]  ;;  %v34_v48 = vld [vmem:[%s2302_s0 + $0x8] sm:$0xff]  ;;  %v1612_v56 = vld [vmem:[%s2301_s1 + $0xd4] ss:$8 sps:$4 sm:$0xff]  }
  0x12   :  { %v1320_v47 = vcombine.high %v33_v46, %v33_v46  ;;  %v1322_v51 = vcombine.high %v34_v48, %v34_v48  ;;  %v1606_v52 = vld [vmem:[%s2301_s1 + $0xc4] ss:$8 sps:$4 sm:$0xff]   ;;  %v1610_v54 = vld [vmem:[%s2301_s1 + $0xc0] ss:$8 sps:$4 sm:$0xff]   ;;  %v1614_v57 = vld [vmem:[%s2301_s1 + $0x1d4] ss:$8 sps:$4 sm:$0xff]   ;;  %v1319_v6 = vcombine.low %v33_v46, %v33_v46  ;;  %v1321_v7 = vcombine.low %v34_v48, %v34_v48 }
  0x13   :  { %844 = vmatpush1.bf16.msra.mxu0 %v1562_v18  ;;  %v1608_v53 = vld [vmem:[%s2301_s1 + $0x1c4] ss:$8 sps:$4 sm:$0xff]   ;;  %v1611_v55 = vld [vmem:[%s2301_s1 + $0x1c0] ss:$8 sps:$4 sm:$0xff]   ;;  %v1616_v58 = vld [vmem:[%s2301_s1 + $0xd0] ss:$8 sps:$4 sm:$0xff]  }
  0x14   :  { %885 = vmatpush1.bf16.msra.mxu1 %v1563_v19  ;;  %845 = vmatprep.subr.bf16.mxu0 %v1564_v20  ;;  %v1617_v59 = vld [vmem:[%s2301_s1 + $0x1d0] ss:$8 sps:$4 sm:$0xff]   ;;  %v1618_v60 = vld [vmem:[%s2301_s1 + $0xe4] ss:$8 sps:$4 sm:$0xff]   ;;  %v1622_v62 = vld [vmem:[%s2301_s1 + $0xe0] ss:$8 sps:$4 sm:$0xff]  }
  0x15   :  { %886 = vmatprep.subr.bf16.mxu1 %v1566_v21  ;;  %867 = vmatprep.mubr.bf16.mxu0 %v1320_v47  ;;  %v1620_v61 = vld [vmem:[%s2301_s1 + $0x1e4] ss:$8 sps:$4 sm:$0xff]   ;;  %v1623_v63 = vld [vmem:[%s2301_s1 + $0x1e0] ss:$8 sps:$4 sm:$0xff]   ;;  %v1624_v0 = vld [vmem:[%s2301_s1 + $0xf4] ss:$8 sps:$4 sm:$0xff]  }
  0x16   :  { %908 = vmatprep.mubr.bf16.mxu1 %v1322_v51  ;;  %v1626_v1 = vld [vmem:[%s2301_s1 + $0x1f4] ss:$8 sps:$4 sm:$0xff]   ;;  %v1628_v2 = vld [vmem:[%s2301_s1 + $0xf0] ss:$8 sps:$4 sm:$0xff]   ;;  %v1636_v4 = vld [vmem:[%s2301_s1 + $0x204] ss:$8 sps:$4 sm:$0xff]  }
  0x17   :  { %846 = vmatpush1.bf16.msra.mxu0 %v1568_v22  ;;  %v1629_v3 = vld [vmem:[%s2301_s1 + $0x1f0] ss:$8 sps:$4 sm:$0xff]   ;;  %v1639_v5 = vld [vmem:[%s2301_s1 + $0x304] ss:$8 sps:$4 sm:$0xff]   ;;  %v1634_v8 = vld [vmem:[%s2301_s1 + $0x200] ss:$8 sps:$4 sm:$0xff]  }
  0x18   :  { %887 = vmatpush1.bf16.msra.mxu1 %v1569_v23  ;;  %847 = vmatprep.subr.bf16.mxu0 %v1570_v24  ;;  %v1637_v9 = vld [vmem:[%s2301_s1 + $0x300] ss:$8 sps:$4 sm:$0xff]   ;;  %v1642_v10 = vld [vmem:[%s2301_s1 + $0x214] ss:$8 sps:$4 sm:$0xff]   ;;  %v1640_v12 = vld [vmem:[%s2301_s1 + $0x210] ss:$8 sps:$4 sm:$0xff]  }
  0x19   :  { %888 = vmatprep.subr.bf16.mxu1 %v1572_v25  ;;  %v1645_v11 = vld [vmem:[%s2301_s1 + $0x314] ss:$8 sps:$4 sm:$0xff]   ;;  %v1643_v13 = vld [vmem:[%s2301_s1 + $0x310] ss:$8 sps:$4 sm:$0xff]   ;;  %v1648_v14 = vld [vmem:[%s2301_s1 + $0x224] ss:$8 sps:$4 sm:$0xff]  }
  0x1a   :  { %v1651_v15 = vld [vmem:[%s2301_s1 + $0x324] ss:$8 sps:$4 sm:$0xff]   ;;  %v1646_v16 = vld [vmem:[%s2301_s1 + $0x220] ss:$8 sps:$4 sm:$0xff]   ;;  %v1654_v18 = vld [vmem:[%s2301_s1 + $0x234] ss:$8 sps:$4 sm:$0xff]  }
  0x1b   :  { %848 = vmatpush1.bf16.msra.mxu0 %v1574_v26  ;;  %v1649_v17 = vld [vmem:[%s2301_s1 + $0x320] ss:$8 sps:$4 sm:$0xff]   ;;  %v1657_v19 = vld [vmem:[%s2301_s1 + $0x334] ss:$8 sps:$4 sm:$0xff]   ;;  %v1652_v20 = vld [vmem:[%s2301_s1 + $0x230] ss:$8 sps:$4 sm:$0xff]  }
  0x1c   :  { %889 = vmatpush1.bf16.msra.mxu1 %v1575_v27  ;;  %849 = vmatprep.subr.bf16.mxu0 %v1576_v28  ;;  %v1655_v21 = vld [vmem:[%s2301_s1 + $0x330] ss:$8 sps:$4 sm:$0xff]   ;;  %v1660_v22 = vld [vmem:[%s2301_s1 + $0x244] ss:$8 sps:$4 sm:$0xff]   ;;  %v1658_v24 = vld [vmem:[%s2301_s1 + $0x240] ss:$8 sps:$4 sm:$0xff]  }
  0x1d   :  { %890 = vmatprep.subr.bf16.mxu1 %v1578_v29  ;;  %v1663_v23 = vld [vmem:[%s2301_s1 + $0x344] ss:$8 sps:$4 sm:$0xff]   ;;  %v1661_v25 = vld [vmem:[%s2301_s1 + $0x340] ss:$8 sps:$4 sm:$0xff]   ;;  %v1666_v26 = vld [vmem:[%s2301_s1 + $0x254] ss:$8 sps:$4 sm:$0xff]  }
  0x1e   :  { %v1669_v27 = vld [vmem:[%s2301_s1 + $0x354] ss:$8 sps:$4 sm:$0xff]   ;;  %v1664_v28 = vld [vmem:[%s2301_s1 + $0x250] ss:$8 sps:$4 sm:$0xff]   ;;  %v1699_v51 = vld [vmem:[%s2301_s1 + $0x3a4] ss:$8 sps:$4 sm:$0xff]  }
  0x1f   :  { %850 = vmatpush1.bf16.msra.mxu0 %v1580_v30  ;;  %v1667_v29 = vld [vmem:[%s2301_s1 + $0x350] ss:$8 sps:$4 sm:$0xff]   ;;  %v1672_v30 = vld [vmem:[%s2301_s1 + $0x264] ss:$8 sps:$4 sm:$0xff]   ;;  %v1690_v46 = vld [vmem:[%s2301_s1 + $0x294] ss:$8 sps:$4 sm:$0xff]  }
  0x20   :  { %891 = vmatpush1.bf16.msra.mxu1 %v1581_v31  ;;  %851 = vmatprep.subr.bf16.mxu0 %v1582_v32  ;;  %v1675_v31 = vld [vmem:[%s2301_s1 + $0x364] ss:$8 sps:$4 sm:$0xff]   ;;  %v2079_v32 = vld [vmem:[%s2302_s0 + $0x10] sm:$0xff] }
  0x21   :  { %892 = vmatprep.subr.bf16.mxu1 %v1584_v33  ;;  %v2084_v33 = vld [vmem:[%s2302_s0 + $0x18] sm:$0xff] }
  0x22   :  { %v1693_v47 = vld [vmem:[%s2301_s1 + $0x394] ss:$8 sps:$4 sm:$0xff]   ;;  %v1688_v48 = vld [vmem:[%s2301_s1 + $0x290] ss:$8 sps:$4 sm:$0xff]  }
  0x23   :  { %852 = vmatpush1.bf16.msra.mxu0 %v1586_v34  ;;  %v1324_v34 = vcombine.high %v2079_v32, %v2079_v32 }
  0x24   :  { %893 = vmatpush1.bf16.msra.mxu1 %v1587_v35  ;;  %853 = vmatprep.subr.bf16.mxu0 %v1588_v36  ;;  %v1326_v35 = vcombine.high %v2084_v33, %v2084_v33  ;;  %v1670_v36 = vld [vmem:[%s2301_s1 + $0x260] ss:$8 sps:$4 sm:$0xff]  }
  0x25   :  { %894 = vmatprep.subr.bf16.mxu1 %v1590_v37  ;;  %v1673_v37 = vld [vmem:[%s2301_s1 + $0x360] ss:$8 sps:$4 sm:$0xff]  }
  0x27   :  { %854 = vmatpush1.bf16.msra.mxu0 %v1592_v38  ;;  %v1678_v38 = vld [vmem:[%s2301_s1 + $0x274] ss:$8 sps:$4 sm:$0xff]  }
  0x28   :  { %895 = vmatpush1.bf16.msra.mxu1 %v1593_v39  ;;  %855 = vmatprep.subr.bf16.mxu0 %v1594_v40  ;;  %v1681_v39 = vld [vmem:[%s2301_s1 + $0x374] ss:$8 sps:$4 sm:$0xff]   ;;  %v1676_v40 = vld [vmem:[%s2301_s1 + $0x270] ss:$8 sps:$4 sm:$0xff]  }
  0x29   :  { %896 = vmatprep.subr.bf16.mxu1 %v1596_v41  ;;  %v1679_v41 = vld [vmem:[%s2301_s1 + $0x370] ss:$8 sps:$4 sm:$0xff]  }
  0x2b   :  { %856 = vmatpush1.bf16.msra.mxu0 %v1598_v42  ;;  %v1684_v42 = vld [vmem:[%s2301_s1 + $0x284] ss:$8 sps:$4 sm:$0xff]  }
  0x2c   :  { %897 = vmatpush1.bf16.msra.mxu1 %v1599_v43  ;;  %857 = vmatprep.subr.bf16.mxu0 %v1600_v44  ;;  %v1687_v43 = vld [vmem:[%s2301_s1 + $0x384] ss:$8 sps:$4 sm:$0xff]   ;;  %v1682_v44 = vld [vmem:[%s2301_s1 + $0x280] ss:$8 sps:$4 sm:$0xff]  }
  0x2d   :  { %898 = vmatprep.subr.bf16.mxu1 %v1602_v45  ;;  %v1685_v45 = vld [vmem:[%s2301_s1 + $0x380] ss:$8 sps:$4 sm:$0xff]  }
  0x2f   :  { %858 = vmatpush1.bf16.msra.mxu0 %v1604_v49  ;;  %v1691_v49 = vld [vmem:[%s2301_s1 + $0x390] ss:$8 sps:$4 sm:$0xff]  }
  0x30   :  { %899 = vmatpush1.bf16.msra.mxu1 %v1605_v50  ;;  %859 = vmatprep.subr.bf16.mxu0 %v1606_v52  ;;  %v1696_v50 = vld [vmem:[%s2301_s1 + $0x2a4] ss:$8 sps:$4 sm:$0xff]   ;;  %v1694_v52 = vld [vmem:[%s2301_s1 + $0x2a0] ss:$8 sps:$4 sm:$0xff]  }
  0x31   :  { %900 = vmatprep.subr.bf16.mxu1 %v1608_v53  ;;  %v1697_v53 = vld [vmem:[%s2301_s1 + $0x3a0] ss:$8 sps:$4 sm:$0xff]  }
  0x33   :  { %860 = vmatpush1.bf16.msra.mxu0 %v1610_v54  ;;  %v1702_v54 = vld [vmem:[%s2301_s1 + $0x2b4] ss:$8 sps:$4 sm:$0xff]  }
  0x34   :  { %901 = vmatpush1.bf16.msra.mxu1 %v1611_v55  ;;  %861 = vmatprep.subr.bf16.mxu0 %v1612_v56  ;;  %v1705_v55 = vld [vmem:[%s2301_s1 + $0x3b4] ss:$8 sps:$4 sm:$0xff]   ;;  %v1700_v56 = vld [vmem:[%s2301_s1 + $0x2b0] ss:$8 sps:$4 sm:$0xff]  }
  0x35   :  { %902 = vmatprep.subr.bf16.mxu1 %v1614_v57  ;;  %v1703_v57 = vld [vmem:[%s2301_s1 + $0x3b0] ss:$8 sps:$4 sm:$0xff]  }
  0x37   :  { %862 = vmatpush1.bf16.msra.mxu0 %v1616_v58  ;;  %v1708_v58 = vld [vmem:[%s2301_s1 + $0x2c4] ss:$8 sps:$4 sm:$0xff]  }
  0x38   :  { %903 = vmatpush1.bf16.msra.mxu1 %v1617_v59  ;;  %863 = vmatprep.subr.bf16.mxu0 %v1618_v60  ;;  %v1711_v59 = vld [vmem:[%s2301_s1 + $0x3c4] ss:$8 sps:$4 sm:$0xff]   ;;  %v1706_v60 = vld [vmem:[%s2301_s1 + $0x2c0] ss:$8 sps:$4 sm:$0xff]  }
  0x39   :  { %904 = vmatprep.subr.bf16.mxu1 %v1620_v61  ;;  %v1709_v61 = vld [vmem:[%s2301_s1 + $0x3c0] ss:$8 sps:$4 sm:$0xff]  }
  0x3b   :  { %864 = vmatpush1.bf16.msra.mxu0 %v1622_v62  ;;  %v1714_v62 = vld [vmem:[%s2301_s1 + $0x2d4] ss:$8 sps:$4 sm:$0xff]  }
  0x3c   :  { %905 = vmatpush1.bf16.msra.mxu1 %v1623_v63  ;;  %865 = vmatprep.subr.bf16.mxu0 %v1624_v0  ;;  %v1717_v63 = vld [vmem:[%s2301_s1 + $0x3d4] ss:$8 sps:$4 sm:$0xff]   ;;  %v1712_v0 = vld [vmem:[%s2301_s1 + $0x2d0] ss:$8 sps:$4 sm:$0xff]  }
  0x3d   :  { %906 = vmatprep.subr.bf16.mxu1 %v1626_v1  ;;  %v1715_v1 = vld [vmem:[%s2301_s1 + $0x3d0] ss:$8 sps:$4 sm:$0xff]  }
  0x3f   :  { %866 = vmatpush1.bf16.msra.mxu0 %v1628_v2  ;;  %v1720_v2 = vld [vmem:[%s2301_s1 + $0x2e4] ss:$8 sps:$4 sm:$0xff]  }
  0x40   :  { %907 = vmatpush1.bf16.msra.mxu1 %v1629_v3  ;;  %917 = vmatprep.subr.bf16.mxu0 %v1636_v4  ;;  %v1723_v3 = vld [vmem:[%s2301_s1 + $0x3e4] ss:$8 sps:$4 sm:$0xff]   ;;  %v1718_v4 = vld [vmem:[%s2301_s1 + $0x2e0] ss:$8 sps:$4 sm:$0xff]  }
  0x41   :  { %958 = vmatprep.subr.bf16.mxu1 %v1639_v5  ;;  %v1721_v5 = vld [vmem:[%s2301_s1 + $0x3e0] ss:$8 sps:$4 sm:$0xff]  }
  0x42   :  { %868 = vmatmul.mubr.bf16.vlgmr.msra.gmra.mrb[0].mxu0 %v1319_v6  ;;  %v1726_v6 = vld [vmem:[%s2301_s1 + $0x2f4] ss:$8 sps:$4 sm:$0xff]  }
  0x43   :  { %909 = vmatmul.mubr.bf16.vlgmr.msra.gmra.mrb[0].mxu1 %v1321_v7  ;;  %918 = vmatpush1.bf16.msra.mxu0 %v1634_v8  ;;  %v1729_v7 = vld [vmem:[%s2301_s1 + $0x3f4] ss:$8 sps:$4 sm:$0xff]   ;;  %v1724_v8 = vld [vmem:[%s2301_s1 + $0x2f0] ss:$8 sps:$4 sm:$0xff]  }
  0x44   :  { %959 = vmatpush1.bf16.msra.mxu1 %v1637_v9  ;;  %919 = vmatprep.subr.bf16.mxu0 %v1642_v10  ;;  %v1727_v9 = vld [vmem:[%s2301_s1 + $0x3f0] ss:$8 sps:$4 sm:$0xff]   ;;  %v1323_v10 = vcombine.low %v2079_v32, %v2079_v32 }
  0x45   :  { %960 = vmatprep.subr.bf16.mxu1 %v1645_v11  ;;  %949 = vmatprep.mubr.bf16.mxu0 %v1324_v34  ;;  %v1325_v11 = vcombine.low %v2084_v33, %v2084_v33  ;;  %v1753_v32 = vld [vmem:[%s2304_s5 + $0x18] sm:$0xff]   ;;  %v1754_v33 = vld [vmem:[%s2304_s5 + $0x20] sm:$0xff]   ;;  %v1755_v34 = vld [vmem:[%s2304_s5 + $0x28] sm:$0xff]  }
  0x46   :  { %990 = vmatprep.mubr.bf16.mxu1 %v1326_v35 }
  0x47   :  { %920 = vmatpush1.bf16.msra.mxu0 %v1640_v12  ;;  %v1734_v12 = vld [vmem:[%s2303_s3 + $0x40] sm:$0xff]  }
  0x48   :  { %961 = vmatpush1.bf16.msra.mxu1 %v1643_v13  ;;  %921 = vmatprep.subr.bf16.mxu0 %v1648_v14  ;;  %v1735_v13 = vld [vmem:[%s2303_s3] sm:$0xff]   ;;  %v1736_v14 = vld [vmem:[%s2303_s3 + $0x48] sm:$0xff]  }
  0x49   :  { %962 = vmatprep.subr.bf16.mxu1 %v1651_v15  ;;  %v1737_v15 = vld [vmem:[%s2303_s3 + $0x8] sm:$0xff]  }
  0x4b   :  { %922 = vmatpush1.bf16.msra.mxu0 %v1646_v16  ;;  %v1738_v16 = vld [vmem:[%s2303_s3 + $0x50] sm:$0xff]  }
  0x4c   :  { %963 = vmatpush1.bf16.msra.mxu1 %v1649_v17  ;;  %923 = vmatprep.subr.bf16.mxu0 %v1654_v18  ;;  %v1739_v17 = vld [vmem:[%s2303_s3 + $0x10] sm:$0xff]   ;;  %v1740_v18 = vld [vmem:[%s2303_s3 + $0x58] sm:$0xff]  }
  0x4d   :  { %964 = vmatprep.subr.bf16.mxu1 %v1657_v19  ;;  %v1741_v19 = vld [vmem:[%s2303_s3 + $0x18] sm:$0xff]  }
  0x4f   :  { %924 = vmatpush1.bf16.msra.mxu0 %v1652_v20  ;;  %v1742_v20 = vld [vmem:[%s2303_s3 + $0x60] sm:$0xff]  }
  0x50   :  { %965 = vmatpush1.bf16.msra.mxu1 %v1655_v21  ;;  %925 = vmatprep.subr.bf16.mxu0 %v1660_v22  ;;  %v1743_v21 = vld [vmem:[%s2303_s3 + $0x20] sm:$0xff]   ;;  %v1744_v22 = vld [vmem:[%s2303_s3 + $0x68] sm:$0xff]  }
  0x51   :  { %966 = vmatprep.subr.bf16.mxu1 %v1663_v23  ;;  %v1745_v23 = vld [vmem:[%s2303_s3 + $0x28] sm:$0xff]  }
  0x53   :  { %926 = vmatpush1.bf16.msra.mxu0 %v1658_v24  ;;  %v1746_v24 = vld [vmem:[%s2303_s3 + $0x70] sm:$0xff]  }
  0x54   :  { %967 = vmatpush1.bf16.msra.mxu1 %v1661_v25  ;;  %927 = vmatprep.subr.bf16.mxu0 %v1666_v26  ;;  %v1747_v25 = vld [vmem:[%s2303_s3 + $0x30] sm:$0xff]   ;;  %v1748_v26 = vld [vmem:[%s2303_s3 + $0x78] sm:$0xff]  }
  0x55   :  { %968 = vmatprep.subr.bf16.mxu1 %v1669_v27  ;;  %v1749_v27 = vld [vmem:[%s2303_s3 + $0x38] sm:$0xff]  }
  0x57   :  { %928 = vmatpush1.bf16.msra.mxu0 %v1664_v28  ;;  %v1758_v28 = vmov 0.0  }
  0x58   :  { %969 = vmatpush1.bf16.msra.mxu1 %v1667_v29  ;;  %929 = vmatprep.subr.bf16.mxu0 %v1672_v30  ;;  %v1750_v29 = vld [vmem:[%s2304_s5] sm:$0xff]   ;;  %v1751_v30 = vld [vmem:[%s2304_s5 + $0x8] sm:$0xff]  }
  0x59   :  { %970 = vmatprep.subr.bf16.mxu1 %v1675_v31  ;;  %v1752_v31 = vld [vmem:[%s2304_s5 + $0x10] sm:$0xff]  }
  0x5b   :  { %930 = vmatpush1.bf16.msra.mxu0 %v1670_v36 }
  0x5c   :  { %971 = vmatpush1.bf16.msra.mxu1 %v1673_v37  ;;  %931 = vmatprep.subr.bf16.mxu0 %v1678_v38 }
  0x5d   :  { %972 = vmatprep.subr.bf16.mxu1 %v1681_v39 }
  0x5f   :  { %932 = vmatpush1.bf16.msra.mxu0 %v1676_v40 }
  0x60   :  { %973 = vmatpush1.bf16.msra.mxu1 %v1679_v41  ;;  %933 = vmatprep.subr.bf16.mxu0 %v1684_v42 }
  0x61   :  { %974 = vmatprep.subr.bf16.mxu1 %v1687_v43 }
  0x63   :  { %934 = vmatpush1.bf16.msra.mxu0 %v1682_v44 }
  0x64   :  { %975 = vmatpush1.bf16.msra.mxu1 %v1685_v45  ;;  %935 = vmatprep.subr.bf16.mxu0 %v1690_v46  ;;  %v1010_v45 = vlaneseq }
  0x65   :  { %976 = vmatprep.subr.bf16.mxu1 %v1693_v47 }
  0x66   :  { %v1011_v46 = vshrl.u32 %v1010_v45, 7 }
  0x67   :  { %936 = vmatpush1.bf16.msra.mxu0 %v1688_v48  ;;  %v1008_v48 = vld [vmem:[%s2305_s2] sm:$0x3] }
  0x68   :  { %977 = vmatpush1.bf16.msra.mxu1 %v1691_v49  ;;  %937 = vmatprep.subr.bf16.mxu0 %v1696_v50  ;;  %v1012_v47 = vsub.s32 0, %v1011_v46  ;;  %v1016_v49 = vsub.s32 1, %v1011_v46 }
  0x69   :  { %978 = vmatprep.subr.bf16.mxu1 %v1699_v51 }
  0x6b   :  { %938 = vmatpush1.bf16.msra.mxu0 %v1694_v52 }
  0x6c   :  { %979 = vmatpush1.bf16.msra.mxu1 %v1697_v53  ;;  %939 = vmatprep.subr.bf16.mxu0 %v1702_v54  ;;  %v1013_v53 = vrot.slane %v1008_v48, %v1012_v47 }
  0x6d   :  { %980 = vmatprep.subr.bf16.mxu1 %v1705_v55 }
  0x6f   :  { %940 = vmatpush1.bf16.msra.mxu0 %v1700_v56 }
  0x70   :  { %981 = vmatpush1.bf16.msra.mxu1 %v1703_v57  ;;  %941 = vmatprep.subr.bf16.mxu0 %v1708_v58  ;;  %v1017_v57 = vrot.slane %v1008_v48, %v1016_v49 }
  0x71   :  { %982 = vmatprep.subr.bf16.mxu1 %v1711_v59 }
  0x73   :  { %942 = vmatpush1.bf16.msra.mxu0 %v1706_v60 }
  0x74   :  { %983 = vmatpush1.bf16.msra.mxu1 %v1709_v61  ;;  %943 = vmatprep.subr.bf16.mxu0 %v1714_v62 }
  0x75   :  { %984 = vmatprep.subr.bf16.mxu1 %v1717_v63 }
  0x77   :  { %944 = vmatpush1.bf16.msra.mxu0 %v1712_v0 }
  0x78   :  { %985 = vmatpush1.bf16.msra.mxu1 %v1715_v1  ;;  %945 = vmatprep.subr.bf16.mxu0 %v1720_v2 }
  0x79   :  { %986 = vmatprep.subr.bf16.mxu1 %v1723_v3 }
  0x7b   :  { %946 = vmatpush1.bf16.msra.mxu0 %v1718_v4 }
  0x7c   :  { %987 = vmatpush1.bf16.msra.mxu1 %v1721_v5  ;;  %947 = vmatprep.subr.bf16.mxu0 %v1726_v6  ;;  %v1756_v6 = vld [vmem:[%s2304_s5 + $0x30] sm:$0xff]  }
  0x7d   :  { %988 = vmatprep.subr.bf16.mxu1 %v1729_v7  ;;  %v1757_v7 = vld [vmem:[%s2304_s5 + $0x38] sm:$0xff]  }
  0x7f   :  { %948 = vmatpush1.bf16.msra.mxu0 %v1724_v8 }
  0x80   :  { %989 = vmatpush1.bf16.msra.mxu1 %v1727_v9  ;;  %1481 = vmatprep.subr.bf16.mxu0 %v1734_v12  ;;  %v1455_v9 = vld [vmem:[%s2306_s4] ss:$0 sm:$0xff] }
  0x81   :  { %1512 = vmatprep.subr.bf16.mxu1 %v1758_v28 }
  0x82   :  { %950 = vmatmul.mubr.bf16.vlgmr.msra.gmra.mrb[4].mxu0 %v1323_v10 }
  0x83   :  { %991 = vmatmul.mubr.bf16.vlgmr.msra.gmra.mrb[4].mxu1 %v1325_v11  ;;  %1482 = vmatpush3.bf16.msra.mxu0 %v1735_v13 }
  0x84   :  { %1483 = vmatprep.subr.bf16.mxu0 %v1736_v14  ;;  %1513 = vmatpush3.bf16.msra.mxu1 %v1750_v29 }
  0x85   :  { %1514 = vmatprep.subr.bf16.mxu1 %v1758_v28  ;;  %1528 = vmatprep.mubr.msk.bf16.mxu1 %vm1759_vm0, %v1758_v28 }
  0x87   :  { %1484 = vmatpush3.bf16.msra.mxu0 %v1737_v15 }
  0x88   :  { %1485 = vmatprep.subr.bf16.mxu0 %v1738_v16  ;;  %1515 = vmatpush3.bf16.msra.mxu1 %v1751_v30 }
  0x89   :  { %1516 = vmatprep.subr.bf16.mxu1 %v1758_v28 }
  0x8b   :  { %1486 = vmatpush3.bf16.msra.mxu0 %v1739_v17  ;;  %v1472_v17 = vld [vmem:[%s2307_s6] ss:$0 sm:$0xff] }
  0x8c   :  { %1487 = vmatprep.subr.bf16.mxu0 %v1740_v18  ;;  %1517 = vmatpush3.bf16.msra.mxu1 %v1752_v31 }
  0x8d   :  { %1518 = vmatprep.subr.bf16.mxu1 %v1758_v28 }
  0x8f   :  { %1488 = vmatpush3.bf16.msra.mxu0 %v1741_v19 }
  0x90   :  { %1489 = vmatprep.subr.bf16.mxu0 %v1742_v20  ;;  %1519 = vmatpush3.bf16.msra.mxu1 %v1753_v32 }
  0x91   :  { %1520 = vmatprep.subr.bf16.mxu1 %v1758_v28 }
  0x93   :  { %1490 = vmatpush3.bf16.msra.mxu0 %v1743_v21 }
  0x94   :  { %1491 = vmatprep.subr.bf16.mxu0 %v1744_v22  ;;  %1521 = vmatpush3.bf16.msra.mxu1 %v1754_v33 }
  0x95   :  { %1522 = vmatprep.subr.bf16.mxu1 %v1758_v28 }
  0x97   :  { %1492 = vmatpush3.bf16.msra.mxu0 %v1745_v23 }
  0x98   :  { %1493 = vmatprep.subr.bf16.mxu0 %v1746_v24  ;;  %1523 = vmatpush3.bf16.msra.mxu1 %v1755_v34 }
  0x99   :  { %1524 = vmatprep.subr.bf16.mxu1 %v1758_v28 }
  0x9b   :  { %1494 = vmatpush3.bf16.msra.mxu0 %v1747_v25 }
  0x9c   :  { %1495 = vmatprep.subr.bf16.mxu0 %v1748_v26  ;;  %1525 = vmatpush3.bf16.msra.mxu1 %v1756_v6 }
  0x9d   :  { %1526 = vmatprep.subr.bf16.mxu1 %v1758_v28 }
  0x9f   :  { %1496 = vmatpush3.bf16.msra.mxu0 %v1749_v27 }
  0xa0   :  { %1527 = vmatpush3.bf16.msra.mxu1 %v1757_v7 }
 0x115   :  { %v869_v35 = vpop.f32.mrb[0].mxu0 }
 0x116   :  { %v910_v36 = vpop.f32.mrb[0].mxu1  ;;  %v871_v38 = vpop.f32.mrb[1].mxu0 }
 0x117   :  { %v911_v37 = vadd.f32 %v910_v36, %v869_v35  ;;  %v912_v39 = vpop.f32.mrb[1].mxu1  ;;  %v873_v41 = vpop.f32.mrb[2].mxu0 }
 0x118   :  { %v913_v40 = vadd.f32 %v912_v39, %v871_v38  ;;  %v914_v42 = vpop.f32.mrb[2].mxu1  ;;  %v874_v43 = vpop.f32.mrb[3].mxu0 }
 0x119   :  { %v915_v44 = vpop.f32.mrb[3].mxu1 }
 0x155   :  { %v951_v50 = vpop.f32.mrb[4].mxu0 }
 0x156   :  { %v992_v51 = vpop.f32.mrb[4].mxu1  ;;  %v952_v52 = vadd.f32 %v951_v50, %v911_v37  ;;  %v953_v54 = vpop.f32.mrb[5].mxu0 }
 0x157   :  { %v994_v55 = vpop.f32.mrb[5].mxu1  ;;  %v954_v56 = vadd.f32 %v953_v54, %v913_v40  ;;  %v955_v58 = vpop.f32.mrb[6].mxu0 }
 0x158   :  { %v996_v59 = vpop.f32.mrb[6].mxu1  ;;  %v993_v60 = vadd.f32 %v992_v51, %v952_v52  ;;  %v956_v61 = vpop.f32.mrb[7].mxu0 }
 0x159   :  { %v997_v62 = vpop.f32.mrb[7].mxu1  ;;  %v995_v63 = vadd.f32 %v994_v55, %v954_v56 }
 0x15a   :  { %v1020_v0 = vadd.f32 %v1013_v53, %v993_v60 }
 0x15b   :  { %v1021_v1 = vadd.f32 %v1017_v57, %v995_v63 }
 0x15c   :  { %v1022_v2 = vmax.f32 %v1020_v0, 0.0 }
 0x15d   :  { %v1023_v3 = vmax.f32 %v1021_v1, 0.0 }
 0x15e   :  { %v1024_v5 = vpack.c.bf16 %v1022_v2, %v1022_v2 }
 0x15f   :  { %v1025_v4 = vpack.c.bf16 %v1023_v3, %v1023_v3 }
 0x161   :  { %1193 = vmatprep.mubr.bf16.mxu0 %v1025_v4 }
 0x162   :  { %1194 = vmatmul.mubr.bf16.vlgmr.msra.gmra.mrb[8].mxu0 %v1024_v5 }
 0x235   :  { %v1497_v8 = vpop.f32.mrb[8].mxu0 }
 0x236   :  { %v1498_v10 = vpop.f32.mrb[9].mxu0 }
 0x237   :  { %v1499_v11 = vadd.f32 %v1498_v10, %v1497_v8  ;;  %v1500_v12 = vpop.f32.mrb[10].mxu0 }
 0x238   :  { %v1501_v13 = vpop.f32.mrb[11].mxu0 }
 0x239   :  { %v1196_v14 = vadd.f32 %v1499_v11, %v1455_v9 }
 0x23b   :  { %v1201_v15 = vmax.f32 %v1196_v14, 0.0 }
 0x23d   :  { %v1202_v16 = vpack.c.bf16 %v1201_v15, %v1201_v15 }
 0x23f   :  { %1529 = vmatmul.mubr.bf16.vlgmr.msra.gmra.mrb[8].mxu1 %v1202_v16 }
 0x312   :  { %v1308_v18 = vpop.f32.mrb[8].mxu1 }
 0x313   :  { %v1309_v19 = vadd.f32 %v1472_v17, %v1308_v18  ;;  %v1530_v20 = vpop.f32.mrb[9].mxu1 }
 0x314   :  { %v1311_v21 = vpop.f32.mrb[10].mxu1 }
 0x315   :  { %1314 = vst [vmem:[%s2308_s7] sm:$0xff] %v1309_v19  ;;  %v1531_v22 = vpop.f32.mrb[11].mxu1 }

</bundles_post_ra>
